<compile_context>
chip_gen: v7x
topology: tpu7x:2x2x1
jax: 0.10.0
libtpu: 0.0.40
codegen_flags: <defaults>
</compile_context>

<pallas_src>
import functools

import jax
import jax.numpy as jnp
from jax.experimental import pallas as pl
from jax.experimental.pallas import tpu as pltpu

USE_BIAS = True


def _round_up(x, m):
    return (x + m - 1) // m * m


def _vmem_capacity_bytes():
    # Host-side hardware query; conservative fallback (v7x per-TC VMEM) if unavailable.
    try:
        cap = int(pltpu.get_tpu_info().vmem_capacity_bytes)
        if cap > 0:
            return cap
    except Exception:
        pass
    return 64 << 20


def _default_activation_dtype():
    # bf16 transcendentals only where the VPU/EUP have a bf16 datapath (v6e / v7x).
    # v5e/older (and unknown) parts keep activation math in f32.
    try:
        kind = jax.devices()[0].device_kind.lower()
    except Exception:
        return jnp.float32
    if any(tag in kind for tag in ("v6", "v7", "7x")):
        return jnp.bfloat16
    return jnp.float32


def _choose_tile(n_tokens, tile_tokens):
    tile_tokens = max(8, int(tile_tokens))
    if n_tokens <= 256:
        # Small batches: single tile, sublane-aligned (multiple of 8).
        return _round_up(max(n_tokens, 1), 8)
    # Multiples of 256 keep the 256x256 MXUs (v6e/v7x) full and stores unmasked;
    # cap at ceil(N/2) so the "parallel" grid has >= 2 steps for megacore sharding (v7x).
    return min(_round_up(tile_tokens, 256), _round_up(pl.cdiv(n_tokens, 2), 256))


# ----------------------------- activations -----------------------------------
def _kernel_recip(v):
    # EUP approximate reciprocal (separate bundle slot) for f32; plain divide otherwise.
    if v.dtype == jnp.float32:
        return pl.reciprocal(v, approx=True)
    return 1.0 / v


def _activation(name, h, act_dtype, recip):
    """Activation math. Transcendental activations run in `act_dtype`
    (bf16 on v6e/v7x, f32 elsewhere); ReLU-family stays in h's dtype (f32)."""
    if name == "None":
        return h
    if name == "ReLU":
        return jnp.maximum(h, 0.0)
    if name == "ReLUSquared":
        r = jnp.maximum(h, 0.0)
        return r * r
    ha = h.astype(act_dtype)
    if name in ("Swish", "SwiGLU"):          # Swish == SiLU; SwiGLU gates SiLU(h) by linear3(h)
        return ha * jax.nn.sigmoid(ha)
    if name == "Mish":
        # mish(x) = x * tanh(softplus(x));  tanh(softplus(x)) == ((1+e^x)^2 - 1)/((1+e^x)^2 + 1)
        # -> only 2 EUP ops (exp + reciprocal). exp argument clamped so (1+e^x)^2 stays finite.
        t = jnp.exp(jnp.minimum(ha, 40.0))
        u = (1.0 + t) * (1.0 + t)
        return ha * ((u - 1.0) * recip(u + 1.0))
    raise Exception("Unknown activation type", name)


# --------------------------------- kernels ------------------------------------
def _mlp2_kernel(x_ref, w1_ref, b1_ref, w2_ref, b2_ref, h_out_ref, y_out_ref,
                 *, activation_type, compute_dtype, activation_dtype):
    cd = compute_dtype
    x = x_ref[...].astype(cd)                                  # in-kernel cast (hidden under MXU/DMA)
    h = jnp.dot(x, w1_ref[...], preferred_element_type=jnp.float32)
    h = h + b1_ref[...]                                        # bias add in f32
    a = _activation(activation_type, h, activation_dtype, _kernel_recip)
    a_lo = a.astype(cd)                                        # single downcast, reused for store + matmul
    h_out_ref[...] = a_lo if h_out_ref.dtype == cd else a.astype(h_out_ref.dtype)
    y = jnp.dot(a_lo, w2_ref[...], preferred_element_type=jnp.float32)
    y_out_ref[...] = (y + b2_ref[...]).astype(y_out_ref.dtype)


def _mlp2_kernel_swiglu(x_ref, w1_ref, b1_ref, w3_ref, w2_ref, b2_ref,
                        h_out_ref, y_out_ref, *, compute_dtype, activation_dtype):
    cd = compute_dtype
    x = x_ref[...].astype(cd)
    h = jnp.dot(x, w1_ref[...], preferred_element_type=jnp.float32) + b1_ref[...]
    # torch quirk: linear3 applied to linear1's OUTPUT (requires F == D).
    g = jnp.dot(h.astype(cd), w3_ref[...], preferred_element_type=jnp.float32)
    silu = _activation("SwiGLU", h, activation_dtype, _kernel_recip).astype(jnp.float32)
    a = silu * g
    a_lo = a.astype(cd)
    h_out_ref[...] = a_lo if h_out_ref.dtype == cd else a.astype(h_out_ref.dtype)
    y = jnp.dot(a_lo, w2_ref[...], preferred_element_type=jnp.float32)
    y_out_ref[...] = (y + b2_ref[...]).astype(y_out_ref.dtype)


def _mlp2_kernel_swiglu_fused(x_ref, w1_ref, b1_ref, w13_ref, b13_ref, w2_ref, b2_ref,
                              h_out_ref, y_out_ref, *, compute_dtype, activation_dtype):
    # Optional restructuring: g = linear3(linear1(x)) == x @ (w1 @ w3) + b1 @ w3, so both
    # matmuls consume x (no serial h->g MXU dependency). Numerics differ slightly from the
    # torch quirk (no low-precision rounding of h before w3), hence gated behind a flag.
    cd = compute_dtype
    x = x_ref[...].astype(cd)
    h = jnp.dot(x, w1_ref[...], preferred_element_type=jnp.float32) + b1_ref[...]
    g = jnp.dot(x, w13_ref[...], preferred_element_type=jnp.float32) + b13_ref[...]
    silu = _activation("SwiGLU", h, activation_dtype, _kernel_recip).astype(jnp.float32)
    a = silu * g
    a_lo = a.astype(cd)
    h_out_ref[...] = a_lo if h_out_ref.dtype == cd else a.astype(h_out_ref.dtype)
    y = jnp.dot(a_lo, w2_ref[...], preferred_element_type=jnp.float32)
    y_out_ref[...] = (y + b2_ref[...]).astype(y_out_ref.dtype)


# --------------------------------- wrapper -------------------------------------
def mlp2_forward(x, params, activation_type, *, tile_tokens=512,
                 compute_dtype=jnp.bfloat16, before_dtype=jnp.bfloat16,
                 activation_dtype=None, out_dtype=None,
                 single_buffer_weights=True, fuse_swiglu_w3=False):
    """Fused MLP2 forward.  Returns (before_linear2, x_out) like the torch module.

    before_dtype defaults to bf16 (halves the largest HBM writeback); pass
    before_dtype=None to inherit x.dtype and match torch precision exactly.
    """
    orig_shape = x.shape
    D = orig_shape[-1]
    cd = jnp.dtype(compute_dtype)
    before_dtype = jnp.dtype(before_dtype) if before_dtype is not None else jnp.dtype(x.dtype)
    out_dtype = jnp.dtype(out_dtype) if out_dtype is not None else jnp.dtype(x.dtype)
    act_dtype = (jnp.dtype(activation_dtype) if activation_dtype is not None
                 else jnp.dtype(_default_activation_dtype()))

    # x is NOT pre-cast or padded: the kernel casts right before the matmul and Pallas
    # masks the ragged last token block (no extra HBM passes / output re-slicing).
    x2 = x.reshape(-1, D)
    N = x2.shape[0]

    swiglu = activation_type == "SwiGLU"
    w1t = params["w1t"].astype(cd)
    w2t = params["w2t"].astype(cd)
    F = w1t.shape[1]
    O = w2t.shape[1]
    b1 = params["b1"].reshape(1, F).astype(jnp.float32)
    b2 = params["b2"].reshape(1, O).astype(jnp.float32)

    if swiglu:
        assert F == D, "SwiGLU path of MLP2Layer requires ffn_inner_dim == model_dim"
        if fuse_swiglu_w3:
            w13 = jnp.dot(params["w1t"].astype(jnp.float32),
                          params["w3t"].astype(jnp.float32)).astype(cd)
            b13 = jnp.dot(params["b1"].astype(jnp.float32).reshape(1, F),
                          params["w3t"].astype(jnp.float32))
            kernel = functools.partial(_mlp2_kernel_swiglu_fused,
                                       compute_dtype=cd, activation_dtype=act_dtype)
            w_args = (w1t, b1, w13, b13, w2t, b2)
            w_shapes = [(D, F), (1, F), (D, F), (1, F), (F, O), (1, O)]
        else:
            w3t = params["w3t"].astype(cd)
            kernel = functools.partial(_mlp2_kernel_swiglu,
                                       compute_dtype=cd, activation_dtype=act_dtype)
            w_args = (w1t, b1, w3t, w2t, b2)
            w_shapes = [(D, F), (1, F), (D, F), (F, O), (1, O)]
    else:
        kernel = functools.partial(_mlp2_kernel, activation_type=activation_type,
                                   compute_dtype=cd, activation_dtype=act_dtype)
        w_args = (w1t, b1, w2t, b2)
        w_shapes = [(D, F), (1, F), (F, O), (1, O)]

    # --- token tiling ---
    tile = _choose_tile(N, tile_tokens)
    grid = (pl.cdiv(N, tile),)

    x_spec = pl.BlockSpec((tile, D), lambda i: (i, 0))
    h_spec = pl.BlockSpec((tile, F), lambda i: (i, 0))
    y_spec = pl.BlockSpec((tile, O), lambda i: (i, 0))

    # --- VMEM budgeting & weight buffering policy (no try/except around execution) ---
    w_bytes = sum(s[0] * s[1] for s in w_shapes if s[0] != 1) * cd.itemsize
    bias_bytes = sum(s[1] for s in w_shapes if s[0] == 1) * 4
    vmem_cap = _vmem_capacity_bytes()
    # Only force single-buffered weights when double-buffering them is a meaningful
    # fraction of VMEM (matters for large F on the 64 MiB v7x part); otherwise the
    # constant index_maps already keep them resident without re-DMA.
    single_wbuf = bool(single_buffer_weights) and (2 * (w_bytes + bias_bytes) > vmem_cap // 4)
    weight_bufs = 1 if single_wbuf else 2

    def _const_spec(shape):
        if single_wbuf:
            return pl.BlockSpec(shape, lambda i: (0, 0), pipeline_mode=pl.Buffered(1))
        return pl.BlockSpec(shape, lambda i: (0, 0))

    in_specs = [x_spec] + [_const_spec(s) for s in w_shapes]

    x_isize = jnp.dtype(x.dtype).itemsize
    io = 2 * tile * (D * x_isize + F * before_dtype.itemsize + O * out_dtype.itemsize)
    n_f32_tmp = 3 if swiglu else 2                    # h, a (+ g for SwiGLU)
    inter = tile * (n_f32_tmp * F + O) * 4
    need = weight_bufs * (w_bytes + bias_bytes) + io + inter
    vmem_limit = min(max(32 << 20, int(1.25 * need) + (2 << 20)), vmem_cap)

    # --- advisory cost estimate ---
    flops = 2 * N * (D * F + F * O) + (2 * N * D * F if swiglu else 0)
    if activation_type in ("Swish", "SwiGLU"):
        transcendentals = N * F
    elif activation_type == "Mish":
        transcendentals = 2 * N * F
    else:
        transcendentals = 0
    bytes_accessed = (N * D * x_isize + w_bytes + bias_bytes
                      + N * F * before_dtype.itemsize + N * O * out_dtype.itemsize)
    cost = pl.CostEstimate(flops=int(flops), transcendentals=int(transcendentals),
                           bytes_accessed=int(bytes_accessed))

    before, out = pl.pallas_call(
        kernel,
        out_shape=(jax.ShapeDtypeStruct((N, F), before_dtype),
                   jax.ShapeDtypeStruct((N, O), out_dtype)),
        grid_spec=pltpu.PrefetchScalarGridSpec(
            num_scalar_prefetch=0,
            grid=grid,
            in_specs=in_specs,
            out_specs=[h_spec, y_spec],
        ),
        compiler_params=pltpu.CompilerParams(
            dimension_semantics=("parallel",),
            vmem_limit_bytes=int(vmem_limit),
        ),
        cost_estimate=cost,
    )(x2, *w_args)

    return (before.reshape(orig_shape[:-1] + (F,)),
            out.reshape(orig_shape[:-1] + (O,)))


# ---------------------------- parameter init -----------------------------------
def init_params(key, model_dim, ffn_inner_dim, out_dim, activation_type):
    k1, k2, k3, k4, k5 = jax.random.split(key, 5)
    s1 = 1.0 / jnp.sqrt(model_dim)
    s2 = 1.0 / jnp.sqrt(ffn_inner_dim)
    params = {
        # stored as (in, out) == transpose of torch Linear.weight
        "w1t": jax.random.uniform(k1, (model_dim, ffn_inner_dim), jnp.float32, -s1, s1),
        "b1":  jax.random.uniform(k2, (ffn_inner_dim,), jnp.float32, -s1, s1),
        "w2t": jax.random.uniform(k3, (ffn_inner_dim, out_dim), jnp.float32, -s2, s2),
        "b2":  jax.random.uniform(k4, (out_dim,), jnp.float32, -s2, s2),
    }
    if activation_type == "SwiGLU":
        params["w3t"] = jax.random.uniform(
            k5, (model_dim, ffn_inner_dim), jnp.float32, -s1, s1)
    return params


# ------------------------------- reference --------------------------------------
def mlp2_reference(x, params, activation_type, *, compute_dtype=jnp.bfloat16,
                   before_dtype=jnp.bfloat16, activation_dtype=None,
                   fuse_swiglu_w3=False):
    """Pure-JAX reference mirroring the kernel's mixed-precision path."""
    cd = jnp.dtype(compute_dtype)
    before_dtype = jnp.dtype(before_dtype) if before_dtype is not None else jnp.dtype(x.dtype)
    act_dtype = (jnp.dtype(activation_dtype) if activation_dtype is not None
                 else jnp.dtype(_default_activation_dtype()))
    recip = lambda v: 1.0 / v

    D = x.shape[-1]
    x2 = x.reshape(-1, D).astype(cd)
    h = jnp.dot(x2, params["w1t"].astype(cd), preferred_element_type=jnp.float32)
    h = h + params["b1"].astype(jnp.float32)
    if activation_type == "SwiGLU":
        if fuse_swiglu_w3:
            w13 = jnp.dot(params["w1t"].astype(jnp.float32),
                          params["w3t"].astype(jnp.float32)).astype(cd)
            b13 = jnp.dot(params["b1"].astype(jnp.float32),
                          params["w3t"].astype(jnp.float32))
            g = jnp.dot(x2, w13, preferred_element_type=jnp.float32) + b13
        else:
            g = jnp.dot(h.astype(cd), params["w3t"].astype(cd),
                        preferred_element_type=jnp.float32)
        a = _activation("SwiGLU", h, act_dtype, recip).astype(jnp.float32) * g
    else:
        a = _activation(activation_type, h, act_dtype, recip)
    a_lo = a.astype(cd)
    before = a_lo if before_dtype == cd else a.astype(before_dtype)
    y = jnp.dot(a_lo, params["w2t"].astype(cd), preferred_element_type=jnp.float32)
    y = y + params["b2"].astype(jnp.float32)
    F = a.shape[-1]
    O = y.shape[-1]
    return (before.reshape(x.shape[:-1] + (F,)),
            y.reshape(x.shape[:-1] + (O,)))


# ---------------------------------- main -----------------------------------------
if __name__ == "__main__":
    key = jax.random.PRNGKey(0)
    batch = 2

    # (activation, model_dim, ffn_inner_dim, out_dim, seq)
    configs = [
        ("SwiGLU", 256, 256, 128, 256),   # F == D, required by the torch linear3(linear1(x)) quirk
        ("Swish",  256, 512, 128, 200),   # ragged token count -> Pallas-masked partial last block
        ("Mish",   128, 256, 128, 128),   # exercises the 2-transcendental Mish path
    ]

    for idx, (act, D, F, O, seq) in enumerate(configs):
        kx, kp = jax.random.split(jax.random.fold_in(key, idx))
        x = jax.random.normal(kx, (batch, seq, D), jnp.float32)
        params = init_params(kp, D, F, O, act)

        before, out = mlp2_forward(x, params, act)
        jax.block_until_ready((before, out))

        ref_before, ref_out = mlp2_reference(x, params, act)
        assert before.shape == ref_before.shape and out.shape == ref_out.shape
        assert jnp.allclose(before.astype(jnp.float32), ref_before.astype(jnp.float32),
                            atol=2e-2, rtol=2e-2), f"'before_linear2' mismatch for {act}"
        assert jnp.allclose(out.astype(jnp.float32), ref_out.astype(jnp.float32),
                            atol=2e-2, rtol=2e-2), f"'x_out' mismatch for {act}"

    print("KERNEL_OK")
</pallas_src>

<mosaic_0001>
module attributes {stable_mosaic.version = 11 : i64} {
  func.func @_mlp2_kernel_swiglu(%arg0: i32, %arg1: memref<256x256xf32, #tpu.memory_space<vmem>>, %arg2: memref<256x256xbf16, #tpu.memory_space<vmem>>, %arg3: memref<1x256xf32, #tpu.memory_space<vmem>>, %arg4: memref<256x256xbf16, #tpu.memory_space<vmem>>, %arg5: memref<256x128xbf16, #tpu.memory_space<vmem>>, %arg6: memref<1x128xf32, #tpu.memory_space<vmem>>, %arg7: memref<256x256xbf16, #tpu.memory_space<vmem>>, %arg8: memref<256x128xf32, #tpu.memory_space<vmem>>) attributes {dimension_semantics = [#tpu.dimension_semantics<parallel>], iteration_bounds = array<i64: 2>, scalar_prefetch = 0 : i64, scratch_operands = 0 : i64, tpu.core_type = #tpu.core_type<tc>, window_params = [{transform_indices = @transform_0, window_bounds = array<i64: 256, 256>}, {pipeline_mode = #tpu.pipeline_mode<synchronous>, transform_indices = @transform_1, window_bounds = array<i64: 256, 256>}, {pipeline_mode = #tpu.pipeline_mode<synchronous>, transform_indices = @transform_2, window_bounds = array<i64: 1, 256>}, {pipeline_mode = #tpu.pipeline_mode<synchronous>, transform_indices = @transform_3, window_bounds = array<i64: 256, 256>}, {pipeline_mode = #tpu.pipeline_mode<synchronous>, transform_indices = @transform_4, window_bounds = array<i64: 256, 128>}, {pipeline_mode = #tpu.pipeline_mode<synchronous>, transform_indices = @transform_5, window_bounds = array<i64: 1, 128>}, {transform_indices = @transform_6, window_bounds = array<i64: 256, 256>}, {transform_indices = @transform_7, window_bounds = array<i64: 256, 128>}]} {
    %c0 = arith.constant 0 : index
    %c0_0 = arith.constant 0 : index
    %0 = vector.load %arg1[%c0, %c0_0] : memref<256x256xf32, #tpu.memory_space<vmem>>, vector<256x256xf32>
    %1 = arith.truncf %0 : vector<256x256xf32> to vector<256x256xbf16>
    %c0_1 = arith.constant 0 : index
    %c0_2 = arith.constant 0 : index
    %2 = vector.load %arg2[%c0_1, %c0_2] : memref<256x256xbf16, #tpu.memory_space<vmem>>, vector<256x256xbf16>
    %cst = arith.constant dense<0.000000e+00> : vector<256x256xf32>
    %3 = tpu.matmul %1, %2, %cst {dimension_numbers = #tpu.dot_dimension_numbers<[1], [0], [0], [1], [0, 0, 1, 1], [], []>} : vector<256x256xbf16>, vector<256x256xbf16>, vector<256x256xf32> -> vector<256x256xf32>
    %c0_3 = arith.constant 0 : index
    %c0_4 = arith.constant 0 : index
    %4 = vector.load %arg3[%c0_3, %c0_4] : memref<1x256xf32, #tpu.memory_space<vmem>>, vector<1x256xf32>
    %5 = vector.broadcast %4 : vector<1x256xf32> to vector<256x256xf32>
    %6 = arith.addf %3, %5 : vector<256x256xf32>
    %7 = arith.truncf %6 : vector<256x256xf32> to vector<256x256xbf16>
    %c0_5 = arith.constant 0 : index
    %c0_6 = arith.constant 0 : index
    %8 = vector.load %arg4[%c0_5, %c0_6] : memref<256x256xbf16, #tpu.memory_space<vmem>>, vector<256x256xbf16>
    %cst_7 = arith.constant dense<0.000000e+00> : vector<256x256xf32>
    %9 = tpu.matmul %7, %8, %cst_7 {dimension_numbers = #tpu.dot_dimension_numbers<[1], [0], [0], [1], [0, 0, 1, 1], [], []>} : vector<256x256xbf16>, vector<256x256xbf16>, vector<256x256xf32> -> vector<256x256xf32>
    %10 = arith.negf %6 : vector<256x256xf32>
    %11 = math.exp %10 : vector<256x256xf32>
    %cst_8 = arith.constant 1.000000e+00 : f32
    %12 = vector.broadcast %cst_8 : f32 to vector<256x256xf32>
    %13 = arith.addf %12, %11 : vector<256x256xf32>
    %14 = arith.divf %12, %13 : vector<256x256xf32>
    %15 = arith.mulf %6, %14 : vector<256x256xf32>
    %16 = arith.mulf %15, %9 : vector<256x256xf32>
    %17 = arith.truncf %16 : vector<256x256xf32> to vector<256x256xbf16>
    %c0_9 = arith.constant 0 : index
    %c0_10 = arith.constant 0 : index
    %18 = vector.load %arg7[%c0_9, %c0_10] : memref<256x256xbf16, #tpu.memory_space<vmem>>, vector<256x256xbf16>
    tpu.vector_store %arg7[%c0_9, %c0_10], %17 {strides = array<i32>} : memref<256x256xbf16, #tpu.memory_space<vmem>>, vector<256x256xbf16>,
    %c0_11 = arith.constant 0 : index
    %c0_12 = arith.constant 0 : index
    %19 = vector.load %arg5[%c0_11, %c0_12] : memref<256x128xbf16, #tpu.memory_space<vmem>>, vector<256x128xbf16>
    %cst_13 = arith.constant dense<0.000000e+00> : vector<256x128xf32>
    %20 = tpu.matmul %17, %19, %cst_13 {dimension_numbers = #tpu.dot_dimension_numbers<[1], [0], [0], [1], [0, 0, 1, 1], [], []>} : vector<256x256xbf16>, vector<256x128xbf16>, vector<256x128xf32> -> vector<256x128xf32>
    %c0_14 = arith.constant 0 : index
    %c0_15 = arith.constant 0 : index
    %21 = vector.load %arg6[%c0_14, %c0_15] : memref<1x128xf32, #tpu.memory_space<vmem>>, vector<1x128xf32>
    %22 = vector.broadcast %21 : vector<1x128xf32> to vector<256x128xf32>
    %23 = arith.addf %20, %22 : vector<256x128xf32>
    %c0_16 = arith.constant 0 : index
    %c0_17 = arith.constant 0 : index
    %24 = vector.load %arg8[%c0_16, %c0_17] : memref<256x128xf32, #tpu.memory_space<vmem>>, vector<256x128xf32>
    tpu.vector_store %arg8[%c0_16, %c0_17], %23 {strides = array<i32>} : memref<256x128xf32, #tpu.memory_space<vmem>>, vector<256x128xf32>,
    return
  }
  func.func @transform_0(%arg0: i32) -> (i32, i32) {
    %c0_i32 = arith.constant 0 : i32
    %c0_i32_0 = arith.constant 0 : i32
    return %arg0, %c0_i32 : i32, i32
  }
  func.func @transform_1(%arg0: i32) -> (i32, i32) {
    %c0_i32 = arith.constant 0 : i32
    %c0_i32_0 = arith.constant 0 : i32
    %c0_i32_1 = arith.constant 0 : i32
    return %c0_i32, %c0_i32_0 : i32, i32
  }
  func.func @transform_2(%arg0: i32) -> (i32, i32) {
    %c0_i32 = arith.constant 0 : i32
    %c0_i32_0 = arith.constant 0 : i32
    %c0_i32_1 = arith.constant 0 : i32
    return %c0_i32, %c0_i32_0 : i32, i32
  }
  func.func @transform_3(%arg0: i32) -> (i32, i32) {
    %c0_i32 = arith.constant 0 : i32
    %c0_i32_0 = arith.constant 0 : i32
    %c0_i32_1 = arith.constant 0 : i32
    return %c0_i32, %c0_i32_0 : i32, i32
  }
  func.func @transform_4(%arg0: i32) -> (i32, i32) {
    %c0_i32 = arith.constant 0 : i32
    %c0_i32_0 = arith.constant 0 : i32
    %c0_i32_1 = arith.constant 0 : i32
    return %c0_i32, %c0_i32_0 : i32, i32
  }
  func.func @transform_5(%arg0: i32) -> (i32, i32) {
    %c0_i32 = arith.constant 0 : i32
    %c0_i32_0 = arith.constant 0 : i32
    %c0_i32_1 = arith.constant 0 : i32
    return %c0_i32, %c0_i32_0 : i32, i32
  }
  func.func @transform_6(%arg0: i32) -> (i32, i32) {
    %c0_i32 = arith.constant 0 : i32
    %c0_i32_0 = arith.constant 0 : i32
    return %arg0, %c0_i32 : i32, i32
  }
  func.func @transform_7(%arg0: i32) -> (i32, i32) {
    %c0_i32 = arith.constant 0 : i32
    %c0_i32_0 = arith.constant 0 : i32
    return %arg0, %c0_i32 : i32, i32
  }
}

</mosaic_0001>

<bundles_post_ra>
// kernel: tpu_custom_call.1
= control target key start
LH: loop header
LB: loop body
LE: loop exit
PB: predicated region body
PF: predicated region fallthrough
CT: control target
= control target key end

     0   :  { %13 = vsyncpa [#allocation3], 0  ;;  %s4503_s0 = inlined_call_operand.hbm [shape: f32[512,256], index: 0, kind: input, shape index: {}]   ;;  %s4504_s1 = inlined_call_operand.hbm [shape: bf16[256,256], index: 1, kind: input, shape index: {}]   ;;  %s4505_s2 = inlined_call_operand.vmem [shape: f32[1,256], index: 2, kind: input, shape index: {}]   ;;  %s4506_s3 = inlined_call_operand.hbm [shape: bf16[256,256], index: 3, kind: input, shape index: {}]   ;;  %s4507_s4 = inlined_call_operand.hbm [shape: bf16[256,128], index: 4, kind: input, shape index: {}]   ;;  %s4508_s5 = inlined_call_operand.vmem [shape: f32[1,128], index: 5, kind: input, shape index: {}]   ;;  %s4509_s6 = inlined_call_operand.hbm [shape: bf16[512,256], index: 6, kind: output, shape index: {0}]   ;;  %s4510_s7 = inlined_call_operand.hbm [shape: f32[512,128], index: 7, kind: output, shape index: {1}]  }
   0x1   :  { %15 = vsyncpa [#allocation3 + $0x1], 0 }
   0x2   :  { %16 = vsyncpa [#allocation6], 0 }
   0x3   :  { %17 = vsyncpa [#allocation9], 0 }
   0x4   :  { %18 = vsyncpa [#allocation4], 0 }
   0x5   :  { %20 = vsyncpa [#allocation4 + $0x1], 0 }
   0x6   :  { %21 = vsyncpa [#allocation12], 0 }
   0x7   :  { %23 = vsyncpa [#allocation12 + $0x1], 0  ;;  %s3619_s24 = smov 0   ;;  %s3621_s25 = smov 0  }
   0x8   :  { %s3623_s26 = smov 0   ;;  %s3625_s27 = smov 0  }
   0x9 LB: > { %s3640_s28 = sadd.s32 4294967295, %s3563_s27   ;;  %s2501_s29 = sadd.s32 4294967294, %s3563_s27   ;;  %s3563_s27 = sphi %s3625_s27, %s4651_s27   ;;  %s3559_s26 = sphi %s3623_s26, %s4650_s26   ;;  %s3555_s25 = sphi %s3621_s25, %s4649_s25   ;;  %s3551_s24 = sphi %s3619_s24, %s4648_s24  }
   0xa   : > { %p49_p0 = scmp.ne.s32.totalorder %s3555_s25, %s3551_s24  ;;  %p4511_p1 = scmp.eq.s32.totalorder %s3640_s28, 0 }
   0xb   : > { %p184_p3 = scmp.eq.s32.totalorder %s2501_s29, 1  ;;  %p2502_p5 = scmp.ge.s32.totalorder %s3563_s27, 1 }
   0xc   : > { %p3649_p4 = por %p4511_p1, %p49_p0  ;;  %p217_p7 = scmp.lt.s32.totalorder %s3563_s27, 3 }
   0xd   : > { %p3654_p6 = por %p184_p3, %p49_p0  ;;  %s3565_s10 = smov [#allocation5]  }
   0xe   : > { %s4572_s30 = scalar_select %p3649_p4, 1, 0 }
   0xf   : > { %s4573_s8 = scalar_select %p3654_p6, 1, 0 }
  0x10   : > { %p3659_p8 = pnand %p2502_p5, %p217_p7  ;;  %s229_s11 = sshll.u32 %s3565_s10, 4  ;;  %s3663_s11 = int_to_ptr.vmem [resolvable:$true] %s229_s11 }
  0x11   : > { %4574 = sst [smem:[#allocation18_spill]] %s4573_s8  ;;  %s3566_s13 = smov [#allocation7]  }
  0x12   : > { %s4575_s9 = scalar_select %p3659_p8, 1, 0 }
  0x13   : > { %p2903_p9 = pneg %p3659_p8  ;;  %s245_s14 = sshll.u32 %s3566_s13, 4  ;;  %s3674_s14 = int_to_ptr.vmem [resolvable:$true] %s245_s14 }
  0x14   : > { %s3567_s15 = smov [#allocation8]   ;;  %s3343_s19 = scalar_lea.hbm %s4504_s1, 4096 }
  0x15   : > { %p3670_p11 = pnand %p2903_p9, %p4511_p1  ;;  %s3676_s16 = sshll.u32 %s3567_s15, 4  ;;  %s259_s16 = int_to_ptr.vmem [resolvable:$true] %s3676_s16 }
  0x16   : > { %p3344_p12 = scmp.ne.s32.totalorder %s4504_s1, %s3343_s19  ;;  %p3350_p5 = scmp.lt.u32.totalorder %s3343_s19, %s4504_s1 }
  0x17   : > { %p3686_p13 = pneg %p3670_p11 }
  0x19   : > { %p3346_p0 = pnand %p3686_p13, %p3344_p12 }
  0x1b   : > { %p3347_p3 = pneg %p3346_p0 }
  0x1d   : > { %p3352_p7 = pnand %p3350_p5, %p3347_p3 }
  0x1f   : > { %3355 = shalt.err (!%p3352_p7)
}
  0x20   : > { %s3356_s10 = scalar_lea.vmem %s3663_s11, 4096  ;;  %p3364_p2 = scmp.lt.s32.totalorder %s3663_s11, %s3663_s11 }
  0x21   : > { %p3357_p9 = scmp.ne.s32.totalorder %s3663_s11, %s3356_s10  ;;  %p3365_p6 = scmp.lt.s32.totalorder %s3356_s10, %s3356_s10 }
  0x23   : > { %p3359_p10 = pnand %p3357_p9, %p3686_p13  ;;  %p3366_p12 = por %p3365_p6, %p3364_p2 }
  0x25   : > { %p3360_p1 = pneg %p3359_p10 }
  0x27   : > { %p3367_p0 = pnand %p3366_p12, %p3360_p1 }
  0x29   : > { %3370 = shalt.err (!%p3367_p0)
}
  0x2a   : > { %s3568_s13 = smov 128   ;;  %s3569_s15 = smov 8  }
  0x2b   : > { %2906 = dma.hbm_to_vmem [thread:$0]  (!%p3670_p11), %s4504_s1, 4096, %s3663_s11, [#allocation6], %s3568_s13, %s3568_s13, %s3569_s15  }
  0x2c   : > { %s3371_s21 = scalar_lea.hbm %s4506_s3, 4096 }
  0x2d   : > { %p3372_p2 = scmp.ne.s32.totalorder %s4506_s3, %s3371_s21  ;;  %p3378_p10 = scmp.lt.u32.totalorder %s3371_s21, %s4506_s3 }
  0x2f   : > { %p3374_p1 = pnand %p3372_p2, %p3686_p13 }
  0x31   : > { %p3375_p6 = pneg %p3374_p1 }
  0x33   : > { %p3380_p3 = pnand %p3378_p10, %p3375_p6 }
  0x35   : > { %3383 = shalt.err (!%p3380_p3)
}
  0x36   : > { %s3384_s11 = scalar_lea.vmem %s3674_s14, 4096  ;;  %p3392_p12 = scmp.lt.s32.totalorder %s3674_s14, %s3674_s14 }
  0x37   : > { %p3385_p5 = scmp.ne.s32.totalorder %s3674_s14, %s3384_s11  ;;  %p3393_p0 = scmp.lt.s32.totalorder %s3384_s11, %s3384_s11 }
  0x39   : > { %p3387_p7 = pnand %p3385_p5, %p3686_p13  ;;  %p3394_p2 = por %p3393_p0, %p3392_p12 }
  0x3b   : > { %p3388_p9 = pneg %p3387_p7 }
  0x3d   : > { %p3395_p1 = pnand %p3394_p2, %p3388_p9 }
  0x3f   : > { %3398 = shalt.err (!%p3395_p1)
}
  0x40   : > { %2909 = dma.hbm_to_vmem [thread:$0]  (!%p3670_p11), %s4506_s3, 4096, %s3674_s14, [#allocation6], %s3568_s13, %s3568_s13, %s3569_s15  }
  0x41   : > { %s3399_s20 = scalar_lea.hbm %s4507_s4, 2048 }
  0x42   : > { %p3400_p6 = scmp.ne.s32.totalorder %s4507_s4, %s3399_s20  ;;  %p3406_p5 = scmp.lt.u32.totalorder %s3399_s20, %s4507_s4 }
  0x44   : > { %p3402_p10 = pnand %p3400_p6, %p3686_p13 }
  0x46   : > { %p3403_p3 = pneg %p3402_p10 }
  0x48   : > { %p3408_p7 = pnand %p3406_p5, %p3403_p3 }
  0x4a   : > { %3411 = shalt.err (!%p3408_p7)
}
  0x4b   : > { %s3412_s11 = scalar_lea.vmem %s259_s16, 2048  ;;  %p3420_p2 = scmp.lt.s32.totalorder %s259_s16, %s259_s16 }
  0x4c   : > { %p3413_p9 = scmp.ne.s32.totalorder %s259_s16, %s3412_s11  ;;  %p3421_p1 = scmp.lt.s32.totalorder %s3412_s11, %s3412_s11 }
  0x4e   : > { %p3415_p12 = pnand %p3413_p9, %p3686_p13  ;;  %p3422_p4 = por %p3421_p1, %p3420_p2 }
  0x50   : > { %p3416_p0 = pneg %p3415_p12 }
  0x52   : > { %p3423_p8 = pnand %p3422_p4, %p3416_p0 }
  0x54   : > { %3426 = shalt.err (!%p3423_p8)
}
  0x55   : > { %s3570_s14 = smov 64   ;;  %s3571_s22 = smov 4  }
  0x56   : > { %2912 = dma.hbm_to_vmem [thread:$0]  (!%p3670_p11), %s4507_s4, 2048, %s259_s16, [#allocation9], %s3570_s14, %s3570_s14, %s3571_s22  }
  0x57   : > { %s3750_s8 = sadd.s32 1, %s3563_s27   ;;  %s36_s18 = sadd.s32 1, %s3559_s26 }
  0x58   : > { %s33_s17 = ssub.s32 %s3563_s27, %s3750_s8  ;;  %p43_p8 = scmp.ne.s32.totalorder %s3559_s26, %s3555_s25 }
  0x59   : > { %p34_p4 = scmp.eq.s32.totalorder %s33_s17, 0  ;;  %p44_p13 = scmp.eq.s32.totalorder %s3563_s27, 0 }
  0x5a   : > { %p2927_p6 = scmp.lt.s32.totalorder %s3563_s27, 2  ;;  %p4578_p3 = scmp.eq.s32.totalorder %s3640_s28, 1 }
  0x5b   : > { %s3760_s19 = scalar_select %p34_p4, %s3559_s26, %s36_s18  }
  0x5c   : > { %p45_p10 = por %p44_p13, %p43_p8  ;;  %p3764_p5 = por %p4578_p3, %p43_p8 }
  0x5d   : > { %s275_s12 = sand.u32 1, %s3559_s26   ;;  %s2705_s21 = sshll.u32 %s3563_s27, 13 }
  0x5e   : > { %s2507_s16 = sshll.u32 %s275_s12, 9  ;;  %s3773_s10 = scalar_lea.hbm %s4503_s0, %s2705_s21 }
  0x5f   : > { %s279_s11 = scalar_lea.vmem [#allocation2], %s2507_s16  ;;  %p3775_p11 = pnand %p2927_p6, %p45_p10 }
  0x60   : > { %s287_s14 = sshll.u32 %s279_s11, 4  ;;  %s3781_s13 = scalar_lea.sflag [#allocation3], %s275_s12  ;;  %s3779_s14 = int_to_ptr.vmem [resolvable:$true] %s287_s14 }
  0x61   : > { %s3427_s15 = scalar_lea.hbm %s3773_s10, 8192  ;;  %p3429_p9 = pneg %p3775_p11 }
  0x62   : > { %p3428_p7 = scmp.ne.s32.totalorder %s3773_s10, %s3427_s15  ;;  %s3432_s21 = scalar_lea.hbm %s4503_s0, 16384 }
  0x63   : > { %p3433_p2 = scmp.lt.u32.totalorder %s3773_s10, %s4503_s0  ;;  %p3434_p1 = scmp.lt.u32.totalorder %s3432_s21, %s3427_s15 }
  0x64   : > { %p3430_p12 = pnand %p3429_p9, %p3428_p7  ;;  %p3436_p8 = scmp.lt.u32.totalorder %s3427_s15, %s3773_s10 }
  0x65   : > { %p3435_p4 = por %p3434_p1, %p3433_p2 }
  0x66   : > { %p3431_p0 = pneg %p3430_p12 }
  0x67   : > { %p3437_p13 = por %p3436_p8, %p3435_p4 }
  0x69   : > { %p3438_p6 = pnand %p3437_p13, %p3431_p0 }
  0x6b   : > { %3441 = shalt.err (!%p3438_p6)
}
  0x6c   : > { %s3442_s12 = scalar_lea.vmem %s3779_s14, 8192  ;;  %s3572_s29 = smov [#allocation2]  }
  0x6d   : > { %p3443_p10 = scmp.ne.s32.totalorder %s3779_s14, %s3442_s12  ;;  %s3447_s11 = sshll.u32 %s3572_s29, 4  ;;  %s3448_s11 = int_to_ptr.vmem [resolvable:$false] %s3447_s11 }
  0x6e   : > { %s3449_s17 = scalar_lea.vmem %s3448_s11, 16384  ;;  %p3450_p12 = scmp.lt.s32.totalorder %s3779_s14, %s3448_s11 }
  0x6f   : > { %p3445_p3 = pnand %p3443_p10, %p3429_p9  ;;  %p3451_p2 = scmp.lt.s32.totalorder %s3449_s17, %s3442_s12 }
  0x71   : > { %p3446_p7 = pneg %p3445_p3  ;;  %p3452_p1 = por %p3451_p2, %p3450_p12 }
  0x73   : > { %p3453_p4 = pnand %p3452_p1, %p3446_p7 }
  0x75   : > { %3456 = shalt.err (!%p3453_p4)
}
  0x76   : > { %s3573_s15 = smov 256   ;;  %s3574_s18 = smov 16  }
  0x77   : > { %2916 = dma.hbm_to_vmem [thread:$0]  (!%p3775_p11), %s3773_s10, 8192, %s3779_s14, %s3781_s13, %s3573_s15, %s3573_s15, %s3574_s18  }
  0x78   : > { %p4581_p9 = scmp.ne.s32.totalorder %s4575_s9, 0 }
  0x7a   : > { %299 = sbr.rel (%p4581_p9) target bundleno = 998 (0x3e6), region = 44 }
  0x81   : > { %s3812_s21 = sand.u32 1, %s3555_s25   ;;  %p4582_p0 = scmp.ne.s32.totalorder %s4572_s30, 0 }
  0x82   : > { %s2512_s16 = sshll.u32 %s3812_s21, 9  ;;  %s302_s23 = scalar_lea.sflag [#allocation3], %s3812_s21 }
  0x83   : > { %s3816_s12 = scalar_lea.vmem [#allocation2], %s2512_s16 }
  0x84   : > { %3530 = dma.done.wait (%p4582_p0), %s302_s23, 8192  }
  0x85   : > { %3532 = vsyncadd (%p4582_p0), %s302_s23, 4294959104  ;;  %p4583_p11 = scmp.eq.s32.totalorder %s3640_s28, 0 }
  0x87   : > { %3534 = dma.done.wait (%p4583_p11), [#allocation6], 8192   ;;  %p4584_p8 = pmov %p4583_p11 }
  0x89   : > { %3536 = vsyncadd (%p4584_p8), [#allocation6], 4294959104  ;;  %p4585_p13 = pmov %p4584_p8 }
  0x8a   : > { %p4586_p6 = pmov %p4584_p8 }
  0x8b   : > { %3538 = dma.done.wait (%p4585_p13), [#allocation9], 2048  }
  0x8c   : > { %3540 = vsyncadd (%p4586_p6), [#allocation9], 4294965248  ;;  %v2975_v0 = vld [vmem:[#allocation5 + $0x4] ss:$8 sps:$4 sm:$0xff]   ;;  %v2977_v1 = vld [vmem:[#allocation5] ss:$8 sps:$4 sm:$0xff]  }
  0x8d   : > { %657 = vmatprep.subr.bf16.mxu0 %v2975_v0  ;;  %v2978_v2 = vld [vmem:[#allocation5 + $0x14] ss:$8 sps:$4 sm:$0xff]   ;;  %2853 = vmatprep.subr.bf16.mxu1 %v2975_v0  ;;  %v2980_v3 = vld [vmem:[#allocation5 + $0x10] ss:$8 sps:$4 sm:$0xff]   ;;  %v2981_v4 = vld [vmem:[#allocation5 + $0x24] ss:$8 sps:$4 sm:$0xff]  }
  0x8e   : > { %658 = vmatpush1.bf16.msra.mxu0 %v2977_v1  ;;  %2869 = vmatpush1.bf16.msra.mxu1 %v2977_v1  ;;  %v2983_v5 = vld [vmem:[#allocation5 + $0x20] ss:$8 sps:$4 sm:$0xff]   ;;  %v2984_v6 = vld [vmem:[#allocation5 + $0x34] ss:$8 sps:$4 sm:$0xff]   ;;  %v2986_v7 = vld [vmem:[#allocation5 + $0x30] ss:$8 sps:$4 sm:$0xff]  }
  0x8f   : > { %659 = vmatprep.subr.bf16.mxu0 %v2978_v2  ;;  %2854 = vmatprep.subr.bf16.mxu1 %v2978_v2  ;;  %v2987_v8 = vld [vmem:[#allocation5 + $0x44] ss:$8 sps:$4 sm:$0xff]   ;;  %v2989_v9 = vld [vmem:[#allocation5 + $0x40] ss:$8 sps:$4 sm:$0xff]   ;;  %v2990_v10 = vld [vmem:[#allocation5 + $0x54] ss:$8 sps:$4 sm:$0xff]  }
  0x90   : > { %v2992_v11 = vld [vmem:[#allocation5 + $0x50] ss:$8 sps:$4 sm:$0xff]   ;;  %v2993_v12 = vld [vmem:[#allocation5 + $0x64] ss:$8 sps:$4 sm:$0xff]   ;;  %v2995_v16 = vld [vmem:[#allocation5 + $0x60] ss:$8 sps:$4 sm:$0xff]  }
  0x91   : > { %v358_v13 = vld [vmem:[%s3816_s12 + $0x8] sm:$0xff]  ;;  %v360_v14 = vld [vmem:[%s3816_s12 + $0x18] sm:$0xff]  ;;  %v357_v38 = vld [vmem:[%s3816_s12] sm:$0xff]  ;;  %s2516_s10 = sshll.u32 %s3812_s21, 8  ;;  %s2739_s22 = sshll.u32 %s3640_s28, 12 }
  0x92   : > { %660 = vmatpush1.bf16.msra.mxu0 %v2980_v3  ;;  %2870 = vmatpush1.bf16.msra.mxu1 %v2980_v3  ;;  %v422_v15 = vpack.c.bf16 %v360_v14, %v358_v13  ;;  %v2996_v17 = vld [vmem:[#allocation5 + $0x74] ss:$8 sps:$4 sm:$0xff]   ;;  %v2998_v18 = vld [vmem:[#allocation5 + $0x70] ss:$8 sps:$4 sm:$0xff]   ;;  %v2999_v19 = vld [vmem:[#allocation5 + $0x84] ss:$8 sps:$4 sm:$0xff]   ;;  %s4348_s15 = scalar_lea.hbm %s4509_s6, %s2739_s22 }
  0x93   : > { %661 = vmatprep.subr.bf16.mxu0 %v2981_v4  ;;  %2855 = vmatprep.subr.bf16.mxu1 %v2981_v4  ;;  %v390_v20 = vld [vmem:[%s3816_s12 + $0x108] sm:$0xff]  ;;  %v392_v21 = vld [vmem:[%s3816_s12 + $0x118] sm:$0xff]  ;;  %v359_v39 = vld [vmem:[%s3816_s12 + $0x10] sm:$0xff]  ;;  %s4197_s14 = scalar_lea.vmem [#allocation10], %s2516_s10  ;;  %s2332_s16 = scalar_lea.sflag [#allocation4], %s3812_s21 }
  0x94   : > { %689 = vmatprep.mubr.bf16.mxu0 %v422_v15  ;;  %v438_v22 = vpack.c.bf16 %v392_v21, %v390_v20  ;;  %v3001_v23 = vld [vmem:[#allocation5 + $0x80] ss:$8 sps:$4 sm:$0xff]   ;;  %v3002_v24 = vld [vmem:[#allocation5 + $0x94] ss:$8 sps:$4 sm:$0xff]   ;;  %v3004_v25 = vld [vmem:[#allocation5 + $0x90] ss:$8 sps:$4 sm:$0xff]   ;;  %v421_v47 = vpack.c.bf16 %v359_v39, %v357_v38 }
  0x95   : > { %v3005_v26 = vld [vmem:[#allocation5 + $0xa4] ss:$8 sps:$4 sm:$0xff]   ;;  %v3007_v27 = vld [vmem:[#allocation5 + $0xa0] ss:$8 sps:$4 sm:$0xff]   ;;  %v3008_v28 = vld [vmem:[#allocation5 + $0xb4] ss:$8 sps:$4 sm:$0xff]  }
  0x96   : > { %662 = vmatpush1.bf16.msra.mxu0 %v2983_v5  ;;  %2871 = vmatpush1.bf16.msra.mxu1 %v2983_v5  ;;  %v3010_v29 = vld [vmem:[#allocation5 + $0xb0] ss:$8 sps:$4 sm:$0xff]   ;;  %v3011_v30 = vld [vmem:[#allocation5 + $0xc4] ss:$8 sps:$4 sm:$0xff]   ;;  %v3013_v31 = vld [vmem:[#allocation5 + $0xc0] ss:$8 sps:$4 sm:$0xff]  }
  0x97   : > { %663 = vmatprep.subr.bf16.mxu0 %v2984_v6  ;;  %2856 = vmatprep.subr.bf16.mxu1 %v2984_v6  ;;  %v3014_v32 = vld [vmem:[#allocation5 + $0xd4] ss:$8 sps:$4 sm:$0xff]   ;;  %v3016_v33 = vld [vmem:[#allocation5 + $0xd0] ss:$8 sps:$4 sm:$0xff]   ;;  %v3017_v34 = vld [vmem:[#allocation5 + $0xe4] ss:$8 sps:$4 sm:$0xff]  }
  0x98   : > { %769 = vmatprep.mubr.bf16.mxu1 %v438_v22  ;;  %v3019_v35 = vld [vmem:[#allocation5 + $0xe0] ss:$8 sps:$4 sm:$0xff]   ;;  %v3020_v36 = vld [vmem:[#allocation5 + $0xf4] ss:$8 sps:$4 sm:$0xff]   ;;  %v3022_v37 = vld [vmem:[#allocation5 + $0xf0] ss:$8 sps:$4 sm:$0xff]  }
  0x99   : > { %v362_v40 = vld [vmem:[%s3816_s12 + $0x28] sm:$0xff]  ;;  %v364_v41 = vld [vmem:[%s3816_s12 + $0x38] sm:$0xff]  ;;  %v389_v42 = vld [vmem:[%s3816_s12 + $0x100] sm:$0xff]  ;;  %s2351_s18 = sshll.u32 %s4197_s14, 4  ;;  %s4351_s18 = int_to_ptr.vmem [resolvable:$true] %s2351_s18 }
  0x9a   : > { %664 = vmatpush1.bf16.msra.mxu0 %v2986_v7  ;;  %2872 = vmatpush1.bf16.msra.mxu1 %v2986_v7  ;;  %v391_v43 = vld [vmem:[%s3816_s12 + $0x110] sm:$0xff]  ;;  %v394_v44 = vld [vmem:[%s3816_s12 + $0x128] sm:$0xff]  ;;  %v396_v45 = vld [vmem:[%s3816_s12 + $0x138] sm:$0xff]  ;;  %v424_v50 = vpack.c.bf16 %v364_v41, %v362_v40  ;;  %s3457_s23 = scalar_lea.vmem %s4351_s18, 4096 }
  0x9b   : > { %665 = vmatprep.subr.bf16.mxu0 %v2987_v8  ;;  %2857 = vmatprep.subr.bf16.mxu1 %v2987_v8  ;;  %v3025_v46 = vld [vmem:[#allocation7 + $0x4] ss:$8 sps:$4 sm:$0xff]   ;;  %v437_v48 = vpack.c.bf16 %v391_v43, %v389_v42  ;;  %v3023_v49 = vld [vmem:[#allocation7] ss:$8 sps:$4 sm:$0xff]   ;;  %v440_v51 = vpack.c.bf16 %v396_v45, %v394_v44  ;;  %v3028_v52 = vld [vmem:[#allocation7 + $0x14] ss:$8 sps:$4 sm:$0xff]   ;;  %p3458_p10 = scmp.ne.s32.totalorder %s4351_s18, %s3457_s23 }
  0x9c   : > { %v361_v53 = vld [vmem:[%s3816_s12 + $0x20] sm:$0xff]  ;;  %v363_v54 = vld [vmem:[%s3816_s12 + $0x30] sm:$0xff]  ;;  %v366_v57 = vld [vmem:[%s3816_s12 + $0x48] sm:$0xff] }
  0x9d   : > { %v393_v55 = vld [vmem:[%s3816_s12 + $0x120] sm:$0xff]  ;;  %v395_v56 = vld [vmem:[%s3816_s12 + $0x130] sm:$0xff]  ;;  %v368_v58 = vld [vmem:[%s3816_s12 + $0x58] sm:$0xff]  ;;  %v423_v63 = vpack.c.bf16 %v363_v54, %v361_v53  ;;  %p3459_p3 = pnand %p3458_p10, %p3764_p5 }
  0x9e   : > { %666 = vmatpush1.bf16.msra.mxu0 %v2989_v9  ;;  %2873 = vmatpush1.bf16.msra.mxu1 %v2989_v9  ;;  %v398_v59 = vld [vmem:[%s3816_s12 + $0x148] sm:$0xff]  ;;  %v400_v60 = vld [vmem:[%s3816_s12 + $0x158] sm:$0xff]  ;;  %v439_v0 = vpack.c.bf16 %v395_v56, %v393_v55  ;;  %v426_v2 = vpack.c.bf16 %v368_v58, %v366_v57  ;;  %v365_v5 = vld [vmem:[%s3816_s12 + $0x40] sm:$0xff] }
  0x9f   : > { %667 = vmatprep.subr.bf16.mxu0 %v2990_v10  ;;  %2858 = vmatprep.subr.bf16.mxu1 %v2990_v10  ;;  %v3026_v61 = vld [vmem:[#allocation7 + $0x10] ss:$8 sps:$4 sm:$0xff]   ;;  %v3031_v62 = vld [vmem:[#allocation7 + $0x24] ss:$8 sps:$4 sm:$0xff]   ;;  %v3029_v1 = vld [vmem:[#allocation7 + $0x20] ss:$8 sps:$4 sm:$0xff]   ;;  %v442_v3 = vpack.c.bf16 %v400_v60, %v398_v59  ;;  %p3460_p7 = pneg %p3459_p3 }
  0xa0   : > { %v3034_v4 = vld [vmem:[#allocation7 + $0x34] ss:$8 sps:$4 sm:$0xff]   ;;  %v370_v7 = vld [vmem:[%s3816_s12 + $0x68] sm:$0xff]  ;;  %v397_v9 = vld [vmem:[%s3816_s12 + $0x140] sm:$0xff] }
  0xa1   : > { %v367_v6 = vld [vmem:[%s3816_s12 + $0x50] sm:$0xff]  ;;  %v372_v8 = vld [vmem:[%s3816_s12 + $0x78] sm:$0xff]  ;;  %v3037_v14 = vld [vmem:[#allocation7 + $0x44] ss:$8 sps:$4 sm:$0xff]  }
  0xa2   : > { %668 = vmatpush1.bf16.msra.mxu0 %v2992_v11  ;;  %2874 = vmatpush1.bf16.msra.mxu1 %v2992_v11  ;;  %v399_v10 = vld [vmem:[%s3816_s12 + $0x150] sm:$0xff]  ;;  %v402_v11 = vld [vmem:[%s3816_s12 + $0x168] sm:$0xff]  ;;  %v425_v15 = vpack.c.bf16 %v367_v6, %v365_v5  ;;  %v369_v21 = vld [vmem:[%s3816_s12 + $0x60] sm:$0xff] }
  0xa3   : > { %669 = vmatprep.subr.bf16.mxu0 %v2993_v12  ;;  %2859 = vmatprep.subr.bf16.mxu1 %v2993_v12  ;;  %v404_v12 = vld [vmem:[%s3816_s12 + $0x178] sm:$0xff]  ;;  %v371_v22 = vld [vmem:[%s3816_s12 + $0x70] sm:$0xff]  ;;  %v378_v39 = vld [vmem:[%s3816_s12 + $0xa8] sm:$0xff] }
  0xa4   : > { %v3032_v13 = vld [vmem:[#allocation7 + $0x30] ss:$8 sps:$4 sm:$0xff]   ;;  %v3040_v20 = vld [vmem:[#allocation7 + $0x54] ss:$8 sps:$4 sm:$0xff]   ;;  %v405_v41 = vld [vmem:[%s3816_s12 + $0x180] sm:$0xff] }
  0xa5   : > { %v375_v38 = vld [vmem:[%s3816_s12 + $0x90] sm:$0xff]  ;;  %v380_v40 = vld [vmem:[%s3816_s12 + $0xb8] sm:$0xff]  ;;  %v410_v43 = vld [vmem:[%s3816_s12 + $0x1a8] sm:$0xff] }
  0xa6   : > { %670 = vmatpush1.bf16.msra.mxu0 %v2995_v16  ;;  %2875 = vmatpush1.bf16.msra.mxu1 %v2995_v16  ;;  %v441_v16 = vpack.c.bf16 %v399_v10, %v397_v9  ;;  %v407_v42 = vld [vmem:[%s3816_s12 + $0x190] sm:$0xff]  ;;  %v412_v44 = vld [vmem:[%s3816_s12 + $0x1b8] sm:$0xff]  ;;  %v377_v53 = vld [vmem:[%s3816_s12 + $0xa0] sm:$0xff] }
  0xa7   : > { %671 = vmatprep.subr.bf16.mxu0 %v2996_v17  ;;  %2860 = vmatprep.subr.bf16.mxu1 %v2996_v17  ;;  %v428_v17 = vpack.c.bf16 %v372_v8, %v370_v7  ;;  %v3044_v45 = vld [vmem:[#allocation7 + $0x70] ss:$8 sps:$4 sm:$0xff]   ;;  %v382_v55 = vld [vmem:[%s3816_s12 + $0xc8] sm:$0xff]  ;;  %v409_v57 = vld [vmem:[%s3816_s12 + $0x1a0] sm:$0xff] }
  0xa8   : > { %v379_v54 = vld [vmem:[%s3816_s12 + $0xb0] sm:$0xff]  ;;  %v384_v56 = vld [vmem:[%s3816_s12 + $0xd8] sm:$0xff]  ;;  %v414_v59 = vld [vmem:[%s3816_s12 + $0x1c8] sm:$0xff] }
  0xa9   : > { %v411_v58 = vld [vmem:[%s3816_s12 + $0x1b0] sm:$0xff]  ;;  %v416_v60 = vld [vmem:[%s3816_s12 + $0x1d8] sm:$0xff]  ;;  %v381_v5 = vld [vmem:[%s3816_s12 + $0xc0] sm:$0xff] }
  0xaa   : > { %672 = vmatpush1.bf16.msra.mxu0 %v2998_v18  ;;  %2876 = vmatpush1.bf16.msra.mxu1 %v2998_v18  ;;  %v444_v18 = vpack.c.bf16 %v404_v12, %v402_v11  ;;  %v383_v6 = vld [vmem:[%s3816_s12 + $0xd0] sm:$0xff]  ;;  %v386_v7 = vld [vmem:[%s3816_s12 + $0xe8] sm:$0xff]  ;;  %v388_v8 = vld [vmem:[%s3816_s12 + $0xf8] sm:$0xff] }
  0xab   : > { %673 = vmatprep.subr.bf16.mxu0 %v2999_v19  ;;  %2861 = vmatprep.subr.bf16.mxu1 %v2999_v19  ;;  %v3035_v19 = vld [vmem:[#allocation7 + $0x40] ss:$8 sps:$4 sm:$0xff]   ;;  %v415_v10 = vld [vmem:[%s3816_s12 + $0x1d0] sm:$0xff]  ;;  %v420_v12 = vld [vmem:[%s3816_s12 + $0x1f8] sm:$0xff] }
  0xac   : > { %v413_v9 = vld [vmem:[%s3816_s12 + $0x1c0] sm:$0xff]  ;;  %v418_v11 = vld [vmem:[%s3816_s12 + $0x1e8] sm:$0xff] }
  0xae   : > { %674 = vmatpush1.bf16.msra.mxu0 %v3001_v23  ;;  %2877 = vmatpush1.bf16.msra.mxu1 %v3001_v23  ;;  %v374_v23 = vld [vmem:[%s3816_s12 + $0x88] sm:$0xff] }
  0xaf   : > { %675 = vmatprep.subr.bf16.mxu0 %v3002_v24  ;;  %2862 = vmatprep.subr.bf16.mxu1 %v3002_v24  ;;  %v376_v24 = vld [vmem:[%s3816_s12 + $0x98] sm:$0xff] }
  0xb2   : > { %676 = vmatpush1.bf16.msra.mxu0 %v3004_v25  ;;  %2878 = vmatpush1.bf16.msra.mxu1 %v3004_v25  ;;  %v401_v25 = vld [vmem:[%s3816_s12 + $0x160] sm:$0xff] }
  0xb3   : > { %677 = vmatprep.subr.bf16.mxu0 %v3005_v26  ;;  %2863 = vmatprep.subr.bf16.mxu1 %v3005_v26  ;;  %v403_v26 = vld [vmem:[%s3816_s12 + $0x170] sm:$0xff] }
  0xb6   : > { %678 = vmatpush1.bf16.msra.mxu0 %v3007_v27  ;;  %2879 = vmatpush1.bf16.msra.mxu1 %v3007_v27  ;;  %v406_v27 = vld [vmem:[%s3816_s12 + $0x188] sm:$0xff] }
  0xb7   : > { %679 = vmatprep.subr.bf16.mxu0 %v3008_v28  ;;  %2864 = vmatprep.subr.bf16.mxu1 %v3008_v28  ;;  %v408_v28 = vld [vmem:[%s3816_s12 + $0x198] sm:$0xff] }
  0xba   : > { %680 = vmatpush1.bf16.msra.mxu0 %v3010_v29  ;;  %2880 = vmatpush1.bf16.msra.mxu1 %v3010_v29  ;;  %v3038_v29 = vld [vmem:[#allocation7 + $0x50] ss:$8 sps:$4 sm:$0xff]  }
  0xbb   : > { %681 = vmatprep.subr.bf16.mxu0 %v3011_v30  ;;  %2865 = vmatprep.subr.bf16.mxu1 %v3011_v30  ;;  %v3043_v30 = vld [vmem:[#allocation7 + $0x64] ss:$8 sps:$4 sm:$0xff]  }
  0xbe   : > { %682 = vmatpush1.bf16.msra.mxu0 %v3013_v31  ;;  %2881 = vmatpush1.bf16.msra.mxu1 %v3013_v31  ;;  %v427_v31 = vpack.c.bf16 %v371_v22, %v369_v21  ;;  %v385_v21 = vld [vmem:[%s3816_s12 + $0xe0] sm:$0xff]  ;;  %v387_v22 = vld [vmem:[%s3816_s12 + $0xf0] sm:$0xff] }
  0xbf   : > { %683 = vmatprep.subr.bf16.mxu0 %v3014_v32  ;;  %2866 = vmatprep.subr.bf16.mxu1 %v3014_v32  ;;  %v443_v32 = vpack.c.bf16 %v403_v26, %v401_v25  ;;  %v3062_v25 = vld [vmem:[#allocation7 + $0xd0] ss:$8 sps:$4 sm:$0xff]   ;;  %v435_v26 = vpack.c.bf16 %v387_v22, %v385_v21 }
  0xc2   : > { %684 = vmatpush1.bf16.msra.mxu0 %v3016_v33  ;;  %2882 = vmatpush1.bf16.msra.mxu1 %v3016_v33  ;;  %v430_v33 = vpack.c.bf16 %v376_v24, %v374_v23  ;;  %v417_v23 = vld [vmem:[%s3816_s12 + $0x1e0] sm:$0xff]  ;;  %v419_v24 = vld [vmem:[%s3816_s12 + $0x1f0] sm:$0xff] }
  0xc3   : > { %685 = vmatprep.subr.bf16.mxu0 %v3017_v34  ;;  %2867 = vmatprep.subr.bf16.mxu1 %v3017_v34  ;;  %v446_v34 = vpack.c.bf16 %v408_v28, %v406_v27  ;;  %v451_v27 = vpack.c.bf16 %v419_v24, %v417_v23  ;;  %v3067_v28 = vld [vmem:[#allocation7 + $0xe4] ss:$8 sps:$4 sm:$0xff]  }
  0xc6   : > { %686 = vmatpush1.bf16.msra.mxu0 %v3019_v35  ;;  %2883 = vmatpush1.bf16.msra.mxu1 %v3019_v35  ;;  %v3041_v35 = vld [vmem:[#allocation7 + $0x60] ss:$8 sps:$4 sm:$0xff]  }
  0xc7   : > { %687 = vmatprep.subr.bf16.mxu0 %v3020_v36  ;;  %2868 = vmatprep.subr.bf16.mxu1 %v3020_v36  ;;  %v3046_v36 = vld [vmem:[#allocation7 + $0x74] ss:$8 sps:$4 sm:$0xff]  }
  0xca   : > { %688 = vmatpush1.bf16.msra.mxu0 %v3022_v37  ;;  %2884 = vmatpush1.bf16.msra.mxu1 %v3022_v37  ;;  %v373_v37 = vld [vmem:[%s3816_s12 + $0x80] sm:$0xff]  ;;  %s3575_s12 = smov [#allocation10]  }
  0xcb   : > { %1074 = vmatprep.subr.bf16.mxu1 %v3025_v46  ;;  %v3049_v46 = vld [vmem:[#allocation7 + $0x84] ss:$8 sps:$4 sm:$0xff]   ;;  %s3461_s30 = sshll.u32 %s3575_s12, 4  ;;  %s3462_s30 = int_to_ptr.vmem [resolvable:$false] %s3461_s30 }
  0xcc   : > { %s3463_s9 = scalar_lea.vmem %s3462_s30, 8192  ;;  %p3464_p12 = scmp.lt.s32.totalorder %s4351_s18, %s3462_s30 }
  0xcd   : > { %690 = vmatmul.mubr.bf16.vlgmr.msra.gmra.mrb[0].mxu0 %v421_v47  ;;  %770 = vmatmul.mubr.bf16.vlgmr.msra.gmra.mrb[0].mxu1 %v437_v48  ;;  %v429_v47 = vpack.c.bf16 %v375_v38, %v373_v37  ;;  %v445_v48 = vpack.c.bf16 %v407_v42, %v405_v41  ;;  %p3465_p2 = scmp.lt.s32.totalorder %s3463_s9, %s3457_s23 }
  0xce   : > { %699 = vmatprep.mubr.bf16.mxu0 %v424_v50  ;;  %779 = vmatprep.mubr.bf16.mxu1 %v440_v51  ;;  %v448_v50 = vpack.c.bf16 %v412_v44, %v410_v43  ;;  %v3047_v51 = vld [vmem:[#allocation7 + $0x80] ss:$8 sps:$4 sm:$0xff]  }
  0xcf   : > { %1075 = vmatpush1.bf16.msra.mxu1 %v3023_v49  ;;  %v432_v49 = vpack.c.bf16 %v380_v40, %v378_v39  ;;  %p3466_p1 = por %p3465_p2, %p3464_p12 }
  0xd0   : > { %1076 = vmatprep.subr.bf16.mxu1 %v3028_v52  ;;  %v3052_v52 = vld [vmem:[#allocation7 + $0x94] ss:$8 sps:$4 sm:$0xff]  }
  0xd1   : > { %p3467_p4 = pnand %p3466_p1, %p3460_p7 }
  0xd3   : > { %1077 = vmatpush1.bf16.msra.mxu1 %v3026_v61  ;;  %v3050_v61 = vld [vmem:[#allocation7 + $0x90] ss:$8 sps:$4 sm:$0xff]  }
  0xd4   : > { %1078 = vmatprep.subr.bf16.mxu1 %v3031_v62  ;;  %v3055_v62 = vld [vmem:[#allocation7 + $0xa4] ss:$8 sps:$4 sm:$0xff]  }
  0xd5   : > { %700 = vmatmul.mubr.bf16.gmra.mrb[4].mxu0 %v423_v63  ;;  %780 = vmatmul.mubr.bf16.gmra.mrb[4].mxu1 %v439_v0  ;;  %v431_v63 = vpack.c.bf16 %v379_v54, %v377_v53  ;;  %v447_v0 = vpack.c.bf16 %v411_v58, %v409_v57  ;;  %v3071_v57 = vld [vmem:[#allocation8 + $0x40] sm:$0xff]  }
  0xd6   : > { %709 = vmatprep.mubr.bf16.mxu0 %v426_v2  ;;  %789 = vmatprep.mubr.bf16.mxu1 %v442_v3  ;;  %v450_v2 = vpack.c.bf16 %v416_v60, %v414_v59  ;;  %v3053_v3 = vld [vmem:[#allocation7 + $0xa0] ss:$8 sps:$4 sm:$0xff]  }
  0xd7   : > { %1079 = vmatpush1.bf16.msra.mxu1 %v3029_v1  ;;  %v434_v1 = vpack.c.bf16 %v384_v56, %v382_v55  ;;  %v3072_v58 = vld [vmem:[#allocation8] sm:$0xff]   ;;  %v3073_v59 = vld [vmem:[#allocation8 + $0x48] sm:$0xff]   ;;  %2741 = vmatprep.subr.bf16.mxu0 %v3071_v57 }
  0xd8   : > { %1080 = vmatprep.subr.bf16.mxu1 %v3034_v4  ;;  %v3058_v4 = vld [vmem:[#allocation7 + $0xb4] ss:$8 sps:$4 sm:$0xff]   ;;  %2742 = vmatpush3.bf16.msra.mxu0 %v3072_v58 }
  0xd9   : > { %2743 = vmatprep.subr.bf16.mxu0 %v3073_v59  ;;  %v3082_v59 = vld [vmem:[#allocation8 + $0x28] sm:$0xff]  }
  0xdb   : > { %1081 = vmatpush1.bf16.msra.mxu1 %v3032_v13  ;;  %v3056_v13 = vld [vmem:[#allocation7 + $0xb0] ss:$8 sps:$4 sm:$0xff]  }
  0xdc   : > { %1082 = vmatprep.subr.bf16.mxu1 %v3037_v14  ;;  %v3061_v14 = vld [vmem:[#allocation7 + $0xc4] ss:$8 sps:$4 sm:$0xff]  }
  0xdd   : > { %710 = vmatmul.mubr.bf16.gmra.mrb[8].mxu0 %v425_v15  ;;  %790 = vmatmul.mubr.bf16.gmra.mrb[8].mxu1 %v441_v16  ;;  %v433_v15 = vpack.c.bf16 %v383_v6, %v381_v5  ;;  %v449_v16 = vpack.c.bf16 %v415_v10, %v413_v9  ;;  %v3074_v6 = vld [vmem:[#allocation8 + $0x8] sm:$0xff]   ;;  %v3075_v9 = vld [vmem:[#allocation8 + $0x50] sm:$0xff]  }
  0xde   : > { %719 = vmatprep.mubr.bf16.mxu0 %v428_v17  ;;  %799 = vmatprep.mubr.bf16.mxu1 %v444_v18  ;;  %v436_v17 = vpack.c.bf16 %v388_v8, %v386_v7  ;;  %v452_v18 = vpack.c.bf16 %v420_v12, %v418_v11 }
  0xdf   : > { %1083 = vmatpush1.bf16.msra.mxu1 %v3035_v19  ;;  %v3059_v19 = vld [vmem:[#allocation7 + $0xc0] ss:$8 sps:$4 sm:$0xff]   ;;  %2744 = vmatpush3.bf16.msra.mxu0 %v3074_v6 }
  0xe0   : > { %1084 = vmatprep.subr.bf16.mxu1 %v3040_v20  ;;  %v3064_v20 = vld [vmem:[#allocation7 + $0xd4] ss:$8 sps:$4 sm:$0xff]   ;;  %2745 = vmatprep.subr.bf16.mxu0 %v3075_v9 }
  0xe3   : > { %1085 = vmatpush1.bf16.msra.mxu1 %v3038_v29  ;;  %v3065_v29 = vld [vmem:[#allocation7 + $0xe0] ss:$8 sps:$4 sm:$0xff]  }
  0xe4   : > { %1086 = vmatprep.subr.bf16.mxu1 %v3043_v30  ;;  %v3070_v30 = vld [vmem:[#allocation7 + $0xf4] ss:$8 sps:$4 sm:$0xff]  }
  0xe5   : > { %720 = vmatmul.mubr.bf16.gmra.mrb[12].mxu0 %v427_v31  ;;  %800 = vmatmul.mubr.bf16.gmra.mrb[12].mxu1 %v443_v32  ;;  %v3068_v31 = vld [vmem:[#allocation7 + $0xf0] ss:$8 sps:$4 sm:$0xff]   ;;  %v487_v32 = vlaneseq }
  0xe6   : > { %729 = vmatprep.mubr.bf16.mxu0 %v430_v33  ;;  %809 = vmatprep.mubr.bf16.mxu1 %v446_v34 }
  0xe7   : > { %1087 = vmatpush1.bf16.msra.mxu1 %v3041_v35  ;;  %v488_v33 = vshrl.u32 %v487_v32, 7  ;;  %v485_v35 = vld [vmem:[%s4505_s2] sm:$0x3] }
  0xe8   : > { %1088 = vmatprep.subr.bf16.mxu1 %v3046_v36 }
  0xe9   : > { %v489_v34 = vsub.s32 0, %v488_v33  ;;  %v493_v36 = vsub.s32 1, %v488_v33 }
  0xeb   : > { %1089 = vmatpush1.bf16.msra.mxu1 %v3044_v45  ;;  %v3897_v37 = vrot.slane %v485_v35, %v489_v34  ;;  %v3899_v39 = vrot.slane %v485_v35, %v493_v36  ;;  %v3080_v34 = vld [vmem:[#allocation8 + $0x20] sm:$0xff]  }
  0xec   : > { %1090 = vmatprep.subr.bf16.mxu1 %v3049_v46 }
  0xed   : > { %730 = vmatmul.mubr.bf16.gmra.mrb[16].mxu0 %v429_v47  ;;  %810 = vmatmul.mubr.bf16.gmra.mrb[16].mxu1 %v445_v48 }
  0xee   : > { %739 = vmatprep.mubr.bf16.mxu0 %v432_v49  ;;  %819 = vmatprep.mubr.bf16.mxu1 %v448_v50 }
  0xef   : > { %1091 = vmatpush1.bf16.msra.mxu1 %v3047_v51 }
  0xf0   : > { %1092 = vmatprep.subr.bf16.mxu1 %v3052_v52 }
  0xf3   : > { %1093 = vmatpush1.bf16.msra.mxu1 %v3050_v61 }
  0xf4   : > { %1094 = vmatprep.subr.bf16.mxu1 %v3055_v62 }
  0xf5   : > { %740 = vmatmul.mubr.bf16.gmra.mrb[20].mxu0 %v431_v63  ;;  %820 = vmatmul.mubr.bf16.gmra.mrb[20].mxu1 %v447_v0 }
  0xf6   : > { %749 = vmatprep.mubr.bf16.mxu0 %v434_v1  ;;  %829 = vmatprep.mubr.bf16.mxu1 %v450_v2 }
  0xf7   : > { %1095 = vmatpush1.bf16.msra.mxu1 %v3053_v3 }
  0xf8   : > { %1096 = vmatprep.subr.bf16.mxu1 %v3058_v4 }
  0xfb   : > { %1097 = vmatpush1.bf16.msra.mxu1 %v3056_v13 }
  0xfc   : > { %1098 = vmatprep.subr.bf16.mxu1 %v3061_v14  ;;  %v3076_v14 = vld [vmem:[#allocation8 + $0x10] sm:$0xff]  }
  0xfd   : > { %750 = vmatmul.mubr.bf16.gmra.mrb[24].mxu0 %v433_v15  ;;  %830 = vmatmul.mubr.bf16.gmra.mrb[24].mxu1 %v449_v16 }
  0xfe   : > { %759 = vmatprep.mubr.bf16.mxu0 %v436_v17  ;;  %839 = vmatprep.mubr.bf16.mxu1 %v452_v18  ;;  %v3077_v17 = vld [vmem:[#allocation8 + $0x58] sm:$0xff]  }
  0xff   : > { %1099 = vmatpush1.bf16.msra.mxu1 %v3059_v19  ;;  %2746 = vmatpush3.bf16.msra.mxu0 %v3076_v14 }
 0x100   : > { %1100 = vmatprep.subr.bf16.mxu1 %v3064_v20  ;;  %2747 = vmatprep.subr.bf16.mxu0 %v3077_v17 }
 0x103   : > { %1101 = vmatpush1.bf16.msra.mxu1 %v3062_v25 }
 0x104   : > { %1102 = vmatprep.subr.bf16.mxu1 %v3067_v28  ;;  %v3078_v28 = vld [vmem:[#allocation8 + $0x18] sm:$0xff]  }
 0x105   : > { %760 = vmatmul.mubr.bf16.gmra.mrb[28].mxu0 %v435_v26  ;;  %840 = vmatmul.mubr.bf16.gmra.mrb[28].mxu1 %v451_v27 }
 0x106   : > { %2748 = vmatpush3.bf16.msra.mxu0 %v3078_v28 }
 0x107   : > { %1103 = vmatpush1.bf16.msra.mxu1 %v3065_v29 }
 0x108   : > { %1104 = vmatprep.subr.bf16.mxu1 %v3070_v30 }
 0x10b   : > { %1105 = vmatpush1.bf16.msra.mxu1 %v3068_v31  ;;  %v3079_v31 = vld [vmem:[#allocation8 + $0x60] sm:$0xff]  }
 0x10c   : > { %2749 = vmatprep.subr.bf16.mxu0 %v3079_v31 }
 0x10d   : > { %2750 = vmatpush3.bf16.msra.mxu0 %v3080_v34 }
 0x1a0   : > { %v691_v38 = vpop.f32.mrb[0].mxu0  ;;  %v771_v40 = vpop.f32.mrb[0].mxu1 }
 0x1a1   : > { %v693_v41 = vpop.f32.mrb[1].mxu0  ;;  %v3902_v42 = vadd.f32 %v771_v40, %v3897_v37  ;;  %v3904_v43 = vpop.f32.mrb[1].mxu1  ;;  %v3907_v46 = vadd.f32 %v691_v38, %v3897_v37 }
 0x1a2   : > { %v695_v44 = vpop.f32.mrb[2].mxu0  ;;  %v775_v45 = vpop.f32.mrb[2].mxu1  ;;  %v3918_v51 = vadd.f32 %v693_v41, %v3899_v39  ;;  %v3081_v41 = vld [vmem:[#allocation8 + $0x68] sm:$0xff]  }
 0x1a3   : > { %4587 = vst [vmem:[#allocation19_spill] sm:$0xff] %v3902_v42  ;;  %v3910_v47 = vadd.f32 %v695_v44, %v3897_v37  ;;  %v697_v48 = vpop.f32.mrb[3].mxu0  ;;  %v3913_v49 = vadd.f32 %v775_v45, %v3897_v37  ;;  %v3915_v50 = vpop.f32.mrb[3].mxu1  ;;  %2751 = vmatprep.subr.bf16.mxu0 %v3081_v41 }
 0x1a4   : > { %v3921_v52 = vadd.f32 %v697_v48, %v3899_v39  ;;  %2752 = vmatpush3.bf16.msra.mxu0 %v3082_v59 }
 0x1a5   : > { %v850_v53 = vpack.c.bf16 %v3910_v47, %v3907_v46 }
 0x1a6   : > { %v851_v54 = vpack.c.bf16 %v3921_v52, %v3918_v51 }
 0x1a8   : > { %v701_v55 = vpop.f32.mrb[4].mxu0  ;;  %1106 = vmatprep.mubr.bf16.mxu1 %v851_v54  ;;  %v781_v56 = vpop.f32.mrb[4].mxu1 }
 0x1a9   : > { %v703_v60 = vpop.f32.mrb[5].mxu0  ;;  %1107 = vmatmul.mubr.bf16.vlgmr.msra.gmra.mrb[32].mxu1 %v850_v53  ;;  %v3928_v61 = vadd.f32 %v781_v56, %v3897_v37  ;;  %v783_v62 = vpop.f32.mrb[5].mxu1  ;;  %v3934_v2 = vadd.f32 %v701_v55, %v3897_v37 }
 0x1aa   : > { %v705_v63 = vpop.f32.mrb[6].mxu0  ;;  %v3931_v0 = vadd.f32 %v783_v62, %v3899_v39  ;;  %v785_v1 = vpop.f32.mrb[6].mxu1  ;;  %v3940_v7 = vadd.f32 %v703_v60, %v3899_v39 }
 0x1ab   : > { %v3937_v3 = vadd.f32 %v705_v63, %v3897_v37  ;;  %v707_v4 = vpop.f32.mrb[7].mxu0  ;;  %v787_v5 = vpop.f32.mrb[7].mxu1  ;;  %v3948_v11 = vadd.f32 %v785_v1, %v3897_v37  ;;  %v3083_v63 = vld [vmem:[#allocation8 + $0x70] sm:$0xff]  }
 0x1ac   : > { %v3943_v8 = vadd.f32 %v707_v4, %v3899_v39  ;;  %v3953_v13 = vadd.f32 %v787_v5, %v3899_v39  ;;  %2753 = vmatprep.subr.bf16.mxu0 %v3083_v63 }
 0x1ad   : > { %v852_v10 = vpack.c.bf16 %v3937_v3, %v3934_v2 }
 0x1ae   : > { %v853_v12 = vpack.c.bf16 %v3943_v8, %v3940_v7 }
 0x1b0   : > { %v711_v15 = vpop.f32.mrb[8].mxu0  ;;  %1116 = vmatprep.mubr.bf16.mxu1 %v853_v12  ;;  %v791_v16 = vpop.f32.mrb[8].mxu1 }
 0x1b1   : > { %v713_v18 = vpop.f32.mrb[9].mxu0  ;;  %1117 = vmatmul.mubr.bf16.gmra.mrb[36].mxu1 %v852_v10  ;;  %v3956_v19 = vadd.f32 %v791_v16, %v3897_v37  ;;  %v793_v20 = vpop.f32.mrb[9].mxu1  ;;  %v3962_v24 = vadd.f32 %v711_v15, %v3897_v37  ;;  %v3084_v10 = vld [vmem:[#allocation8 + $0x30] sm:$0xff]  }
 0x1b2   : > { %v715_v21 = vpop.f32.mrb[10].mxu0  ;;  %v3959_v22 = vadd.f32 %v793_v20, %v3899_v39  ;;  %v795_v23 = vpop.f32.mrb[10].mxu1  ;;  %v3968_v29 = vadd.f32 %v713_v18, %v3899_v39  ;;  %2754 = vmatpush3.bf16.msra.mxu0 %v3084_v10 }
 0x1b3   : > { %v3965_v25 = vadd.f32 %v715_v21, %v3897_v37  ;;  %v717_v26 = vpop.f32.mrb[11].mxu0  ;;  %v797_v27 = vpop.f32.mrb[11].mxu1  ;;  %v3978_v36 = vadd.f32 %v795_v23, %v3897_v37 }
 0x1b4   : > { %v3971_v30 = vadd.f32 %v717_v26, %v3899_v39  ;;  %v3981_v38 = vadd.f32 %v797_v27, %v3899_v39 }
 0x1b5   : > { %v854_v32 = vpack.c.bf16 %v3965_v25, %v3962_v24 }
 0x1b6   : > { %v855_v33 = vpack.c.bf16 %v3971_v30, %v3968_v29 }
 0x1b8   : > { %v721_v35 = vpop.f32.mrb[12].mxu0  ;;  %1126 = vmatprep.mubr.bf16.mxu1 %v855_v33  ;;  %v801_v40 = vpop.f32.mrb[12].mxu1 }
 0x1b9   : > { %v723_v44 = vpop.f32.mrb[13].mxu0  ;;  %1127 = vmatmul.mubr.bf16.gmra.mrb[40].mxu1 %v854_v32  ;;  %v3984_v45 = vadd.f32 %v801_v40, %v3897_v37  ;;  %v803_v48 = vpop.f32.mrb[13].mxu1  ;;  %v3987_v55 = vadd.f32 %v721_v35, %v3897_v37 }
 0x1ba   : > { %v725_v53 = vpop.f32.mrb[14].mxu0  ;;  %v805_v54 = vpop.f32.mrb[14].mxu1  ;;  %v3993_v60 = vadd.f32 %v723_v44, %v3899_v39  ;;  %v4003_v5 = vadd.f32 %v803_v48, %v3899_v39 }
 0x1bb   : > { %v3990_v56 = vadd.f32 %v725_v53, %v3897_v37  ;;  %v727_v57 = vpop.f32.mrb[15].mxu0  ;;  %v807_v58 = vpop.f32.mrb[15].mxu1  ;;  %v4006_v6 = vadd.f32 %v805_v54, %v3897_v37 }
 0x1bc   : > { %v3996_v62 = vadd.f32 %v727_v57, %v3899_v39  ;;  %v4009_v9 = vadd.f32 %v807_v58, %v3899_v39 }
 0x1bd   : > { %v856_v1 = vpack.c.bf16 %v3990_v56, %v3987_v55  ;;  %4588 = vst [vmem:[#allocation20_spill] sm:$0xff] %v4006_v6 }
 0x1be   : > { %v857_v4 = vpack.c.bf16 %v3996_v62, %v3993_v60  ;;  %4589 = vst [vmem:[#allocation21_spill] sm:$0xff] %v4009_v9 }
 0x1c0   : > { %v731_v12 = vpop.f32.mrb[16].mxu0  ;;  %1136 = vmatprep.mubr.bf16.mxu1 %v857_v4  ;;  %v811_v14 = vpop.f32.mrb[16].mxu1 }
 0x1c1   : > { %v733_v15 = vpop.f32.mrb[17].mxu0  ;;  %1137 = vmatmul.mubr.bf16.gmra.mrb[44].mxu1 %v856_v1  ;;  %v813_v16 = vpop.f32.mrb[17].mxu1  ;;  %v4012_v20 = vadd.f32 %v731_v12, %v3897_v37  ;;  %v4028_v33 = vadd.f32 %v811_v14, %v3897_v37 }
 0x1c2   : > { %v735_v17 = vpop.f32.mrb[18].mxu0  ;;  %v815_v18 = vpop.f32.mrb[18].mxu1  ;;  %v4018_v27 = vadd.f32 %v733_v15, %v3899_v39  ;;  %v4031_v34 = vadd.f32 %v813_v16, %v3899_v39 }
 0x1c3   : > { %v4015_v21 = vadd.f32 %v735_v17, %v3897_v37  ;;  %v737_v23 = vpop.f32.mrb[19].mxu0  ;;  %v817_v26 = vpop.f32.mrb[19].mxu1  ;;  %4591 = vst [vmem:[#allocation23_spill] sm:$0xff] %v4028_v33  ;;  %v4034_v35 = vadd.f32 %v815_v18, %v3897_v37 }
 0x1c4   : > { %v4021_v28 = vadd.f32 %v737_v23, %v3899_v39  ;;  %4592 = vst [vmem:[#allocation24_spill] sm:$0xff] %v4031_v34  ;;  %v4037_v40 = vadd.f32 %v817_v26, %v3899_v39 }
 0x1c5   : > { %v858_v31 = vpack.c.bf16 %v4015_v21, %v4012_v20  ;;  %4593 = vst [vmem:[#allocation25_spill] sm:$0xff] %v4034_v35 }
 0x1c6   : > { %4590 = vst [vmem:[#allocation22_spill] sm:$0xff] %v4021_v28  ;;  %v859_v32 = vpack.c.bf16 %v4021_v28, %v4018_v27  ;;  %4594 = vst [vmem:[#allocation26_spill] sm:$0xff] %v4037_v40 }
 0x1c8   : > { %v741_v41 = vpop.f32.mrb[20].mxu0  ;;  %1146 = vmatprep.mubr.bf16.mxu1 %v859_v32  ;;  %v821_v44 = vpop.f32.mrb[20].mxu1 }
 0x1c9   : > { %v743_v48 = vpop.f32.mrb[21].mxu0  ;;  %1147 = vmatmul.mubr.bf16.gmra.mrb[48].mxu1 %v858_v31  ;;  %v823_v53 = vpop.f32.mrb[21].mxu1  ;;  %v4040_v58 = vadd.f32 %v741_v41, %v3897_v37  ;;  %v4056_v15 = vadd.f32 %v821_v44, %v3897_v37 }
 0x1ca   : > { %v745_v54 = vpop.f32.mrb[22].mxu0  ;;  %v825_v57 = vpop.f32.mrb[22].mxu1  ;;  %v4046_v4 = vadd.f32 %v743_v48, %v3899_v39  ;;  %v4059_v16 = vadd.f32 %v823_v53, %v3899_v39 }
 0x1cb   : > { %4595 = vst [vmem:[#allocation27_spill] sm:$0xff] %v4040_v58  ;;  %v4043_v59 = vadd.f32 %v745_v54, %v3897_v37  ;;  %v747_v63 = vpop.f32.mrb[23].mxu0  ;;  %v827_v1 = vpop.f32.mrb[23].mxu1  ;;  %4599 = vst [vmem:[#allocation31_spill] sm:$0xff] %v4056_v15  ;;  %v4062_v17 = vadd.f32 %v825_v57, %v3897_v37 }
 0x1cc   : > { %4597 = vst [vmem:[#allocation29_spill] sm:$0xff] %v4046_v4  ;;  %v4049_v10 = vadd.f32 %v747_v63, %v3899_v39  ;;  %4600 = vst [vmem:[#allocation32_spill] sm:$0xff] %v4059_v16  ;;  %v4065_v18 = vadd.f32 %v827_v1, %v3899_v39 }
 0x1cd   : > { %4596 = vst [vmem:[#allocation28_spill] sm:$0xff] %v4043_v59  ;;  %v860_v12 = vpack.c.bf16 %v4043_v59, %v4040_v58  ;;  %4601 = vst [vmem:[#allocation33_spill] sm:$0xff] %v4062_v17 }
 0x1ce   : > { %4598 = vst [vmem:[#allocation30_spill] sm:$0xff] %v4049_v10  ;;  %v861_v14 = vpack.c.bf16 %v4049_v10, %v4046_v4  ;;  %4602 = vst [vmem:[#allocation34_spill] sm:$0xff] %v4065_v18 }
 0x1d0   : > { %v751_v23 = vpop.f32.mrb[24].mxu0  ;;  %1156 = vmatprep.mubr.bf16.mxu1 %v861_v14  ;;  %v831_v26 = vpop.f32.mrb[24].mxu1 }
 0x1d1   : > { %v753_v31 = vpop.f32.mrb[25].mxu0  ;;  %1157 = vmatmul.mubr.bf16.gmra.mrb[52].mxu1 %v860_v12  ;;  %v833_v32 = vpop.f32.mrb[25].mxu1  ;;  %v4068_v44 = vadd.f32 %v751_v23, %v3897_v37  ;;  %v4084_v23 = vadd.f32 %v831_v26, %v3897_v37 }
 0x1d2   : > { %v755_v41 = vpop.f32.mrb[26].mxu0  ;;  %v835_v48 = vpop.f32.mrb[26].mxu1  ;;  %v4074_v63 = vadd.f32 %v753_v31, %v3899_v39 }
 0x1d3   : > { %4603 = vst [vmem:[#allocation35_spill] sm:$0xff] %v4068_v44  ;;  %v4071_v53 = vadd.f32 %v755_v41, %v3897_v37  ;;  %v757_v54 = vpop.f32.mrb[27].mxu0  ;;  %v837_v57 = vpop.f32.mrb[27].mxu1  ;;  %4607 = vst [vmem:[#allocation39_spill] sm:$0xff] %v4084_v23  ;;  %v4087_v41 = vadd.f32 %v833_v32, %v3899_v39  ;;  %v4090_v10 = vadd.f32 %v835_v48, %v3897_v37 }
 0x1d4   : > { %4605 = vst [vmem:[#allocation37_spill] sm:$0xff] %v4074_v63  ;;  %v4077_v1 = vadd.f32 %v757_v54, %v3899_v39  ;;  %v4093_v31 = vadd.f32 %v837_v57, %v3899_v39 }
 0x1d5   : > { %4604 = vst [vmem:[#allocation36_spill] sm:$0xff] %v4071_v53  ;;  %v862_v12 = vpack.c.bf16 %v4071_v53, %v4068_v44  ;;  %4608 = vst [vmem:[#allocation40_spill] sm:$0xff] %v4087_v41 }
 0x1d6   : > { %4606 = vst [vmem:[#allocation38_spill] sm:$0xff] %v4077_v1  ;;  %v863_v14 = vpack.c.bf16 %v4077_v1, %v4074_v63  ;;  %4609 = vst [vmem:[#allocation41_spill] sm:$0xff] %v4090_v10 }
 0x1d7   : > { %4610 = vst [vmem:[#allocation42_spill] sm:$0xff] %v4093_v31 }
 0x1d8   : > { %v761_v54 = vpop.f32.mrb[28].mxu0  ;;  %1166 = vmatprep.mubr.bf16.mxu1 %v863_v14  ;;  %v841_v59 = vpop.f32.mrb[28].mxu1 }
 0x1d9   : > { %v763_v4 = vpop.f32.mrb[29].mxu0  ;;  %1167 = vmatmul.mubr.bf16.gmra.mrb[56].mxu1 %v862_v12  ;;  %v843_v53 = vpop.f32.mrb[29].mxu1  ;;  %v4096_v1 = vadd.f32 %v841_v59, %v3897_v37  ;;  %v4099_v32 = vadd.f32 %v761_v54, %v3897_v37  ;;  %v4109_v12 = vadd.f32 %v3904_v43, %v3899_v39  ;;  %v4113_v59 = vadd.f32 %v3915_v50, %v3899_v39 }
 0x1da   : > { %v765_v44 = vpop.f32.mrb[30].mxu0  ;;  %v845_v26 = vpop.f32.mrb[30].mxu1  ;;  %v4105_v57 = vadd.f32 %v843_v53, %v3899_v39  ;;  %v4116_v58 = vadd.f32 %v763_v4, %v3899_v39  ;;  %v869_v4 = vpack.c.bf16 %v3953_v13, %v3931_v0 }
 0x1db   : > { %4611 = vst [vmem:[#allocation43_spill] sm:$0xff] %v4096_v1  ;;  %v4102_v48 = vadd.f32 %v765_v44, %v3897_v37  ;;  %v767_v63 = vpop.f32.mrb[31].mxu0  ;;  %v847_v14 = vpop.f32.mrb[31].mxu1  ;;  %4613 = vst [vmem:[#allocation45_spill] sm:$0xff] %v4113_v59  ;;  %v867_v43 = vpack.c.bf16 %v4113_v59, %v4109_v12  ;;  %v4128_v28 = vadd.f32 %v845_v26, %v3897_v37 }
 0x1dc   : > { %4612 = vst [vmem:[#allocation44_spill] sm:$0xff] %v4105_v57  ;;  %v4119_v54 = vadd.f32 %v767_v63, %v3899_v39  ;;  %v4131_v50 = vadd.f32 %v847_v14, %v3899_v39  ;;  %v866_v63 = vpack.c.bf16 %v3913_v49, %v3902_v42  ;;  %v871_v59 = vpack.c.bf16 %v3981_v38, %v3959_v22  ;;  %v3085_v14 = vld [vmem:[#allocation8 + $0x78] sm:$0xff]  }
 0x1dd   : > { %v864_v44 = vpack.c.bf16 %v4102_v48, %v4099_v32  ;;  %4614 = vst [vmem:[#allocation46_spill] sm:$0xff] %v4128_v28  ;;  %v868_v37 = vpack.c.bf16 %v3948_v11, %v3928_v61  ;;  %v873_v39 = vpack.c.bf16 %v4009_v9, %v4003_v5  ;;  %v870_v26 = vpack.c.bf16 %v3978_v36, %v3956_v19 }
 0x1de   : > { %v865_v53 = vpack.c.bf16 %v4119_v54, %v4116_v58  ;;  %4615 = vst [vmem:[#allocation47_spill] sm:$0xff] %v4131_v50  ;;  %2755 = vmatprep.subr.bf16.mxu0 %v3085_v14  ;;  %v880_v14 = vpack.c.bf16 %v4128_v28, %v4096_v1  ;;  %v2590_v28 = vmul.f32 -1.442695, %v3962_v24 }
 0x1e0   : > { %1176 = vmatprep.mubr.bf16.mxu1 %v865_v53  ;;  %v872_v53 = vpack.c.bf16 %v4006_v6, %v3984_v45 }
 0x1e1   : > { %1177 = vmatmul.mubr.bf16.gmra.mrb[60].mxu1 %v864_v44  ;;  %v875_v44 = vpack.c.bf16 %v4037_v40, %v4031_v34 }
 0x1e2   : > { %1186 = vmatprep.mubr.bf16.mxu1 %v867_v43  ;;  %v3086_v43 = vld [vmem:[#allocation8 + $0x38] sm:$0xff]  }
 0x1e3   : > { %2756 = vmatpush3.bf16.msra.mxu0 %v3086_v43  ;;  %v2584_v43 = vmul.f32 -1.442695, %v3910_v47 }
 0x1e9   : > { %1187 = vmatmul.mubr.bf16.gmra.mrb[64].mxu1 %v866_v63  ;;  %v879_v63 = vpack.c.bf16 %v4093_v31, %v4087_v41 }
 0x1ea   : > { %1196 = vmatprep.mubr.bf16.mxu1 %v869_v4  ;;  %v874_v4 = vpack.c.bf16 %v4034_v35, %v4028_v33  ;;  %v4619_v33 = vld [vmem:[#allocation28_spill] sm:$0xff] }
 0x1f1   : > { %1197 = vmatmul.mubr.bf16.gmra.mrb[68].mxu1 %v868_v37  ;;  %v876_v37 = vpack.c.bf16 %v4062_v17, %v4056_v15 }
 0x1f2   : > { %1206 = vmatprep.mubr.bf16.mxu1 %v871_v59  ;;  %v877_v59 = vpack.c.bf16 %v4065_v18, %v4059_v16 }
 0x1f9   : > { %1207 = vmatmul.mubr.bf16.gmra.mrb[72].mxu1 %v870_v26  ;;  %v878_v26 = vpack.c.bf16 %v4090_v10, %v4084_v23 }
 0x1fa   : > { %1216 = vmatprep.mubr.bf16.mxu1 %v873_v39  ;;  %v881_v39 = vpack.c.bf16 %v4131_v50, %v4105_v57 }
 0x201   : > { %1217 = vmatmul.mubr.bf16.gmra.mrb[76].mxu1 %v872_v53  ;;  %v2583_v53 = vmul.f32 -1.442695, %v3918_v51 }
 0x202   : > { %1226 = vmatprep.mubr.bf16.mxu1 %v875_v44  ;;  %v2582_v44 = vmul.f32 -1.442695, %v3907_v46 }
 0x204   : > { %3087 = vpow2.f32 %v2582_v44  ;;  %v2614_v44 = vmul.f32 -1.442695, %v3902_v42 }
 0x205   : > { %3089 = vpow2.f32 %v2583_v53 }
 0x206   : > { %3091 = vpow2.f32 %v2584_v43  ;;  %v2591_v43 = vmul.f32 -1.442695, %v3968_v29 }
 0x209   : > { %1227 = vmatmul.mubr.bf16.gmra.mrb[80].mxu1 %v874_v4  ;;  %v2586_v4 = vmul.f32 -1.442695, %v3934_v2 }
 0x20a   : > { %1236 = vmatprep.mubr.bf16.mxu1 %v877_v59  ;;  %v2585_v59 = vmul.f32 -1.442695, %v3921_v52 }
 0x20c   : > { %3093 = vpow2.f32 %v2585_v59  ;;  %v2592_v59 = vmul.f32 -1.442695, %v3965_v25 }
 0x20d   : > { %3095 = vpow2.f32 %v2586_v4 }
 0x211   : > { %1237 = vmatmul.mubr.bf16.gmra.mrb[84].mxu1 %v876_v37  ;;  %v2588_v37 = vmul.f32 -1.442695, %v3937_v3 }
 0x212   : > { %1246 = vmatprep.mubr.bf16.mxu1 %v879_v63  ;;  %v2587_v63 = vmul.f32 -1.442695, %v3940_v7 }
 0x214   : > { %3097 = vpow2.f32 %v2587_v63  ;;  %v2593_v63 = vmul.f32 -1.442695, %v3971_v30 }
 0x215   : > { %3099 = vpow2.f32 %v2588_v37 }
 0x219   : > { %1247 = vmatmul.mubr.bf16.gmra.mrb[88].mxu1 %v878_v26  ;;  %v2589_v26 = vmul.f32 -1.442695, %v3943_v8 }
 0x21a   : > { %1256 = vmatprep.mubr.bf16.mxu1 %v881_v39  ;;  %v3088_v39 = vpop.eup %3087 }
 0x21b   : > { %v1459_v53 = vadd.f32 1.0, %v3088_v39  ;;  %3101 = vpow2.f32 %v2589_v26 }
 0x21c   : > { %3103 = vpow2.f32 %v2614_v44 }
 0x21d   : > { %3105 = vrcp.f32 %v1459_v53  ;;  %v2594_v53 = vmul.f32 -1.442695, %v3987_v55 }
 0x221   : > { %1257 = vmatmul.mubr.bf16.gmra.mrb[92].mxu1 %v880_v14  ;;  %v3090_v14 = vpop.eup %3089 }
 0x222   : > { %v1460_v50 = vadd.f32 1.0, %v3090_v14  ;;  %v3092_v57 = vpop.eup %3091 }
 0x223   : > { %v3094_v1 = vpop.eup %3093  ;;  %v1461_v31 = vadd.f32 1.0, %v3092_v57 }
 0x224   : > { %v3096_v4 = vpop.eup %3095  ;;  %3107 = vrcp.f32 %v1460_v50  ;;  %v1462_v14 = vadd.f32 1.0, %v3094_v1  ;;  %v2595_v50 = vmul.f32 -1.442695, %v3993_v60 }
 0x225   : > { %v3098_v37 = vpop.eup %3097  ;;  %3109 = vpow2.f32 %v2590_v28  ;;  %v1463_v26 = vadd.f32 1.0, %v3096_v4  ;;  %v2596_v28 = vmul.f32 -1.442695, %v3990_v56  ;;  %v2598_v4 = vmul.f32 -1.442695, %v4012_v20 }
 0x226   : > { %v3100_v39 = vpop.eup %3099  ;;  %3111 = vpow2.f32 %v2591_v43  ;;  %v1464_v10 = vadd.f32 1.0, %v3098_v37  ;;  %v2599_v37 = vmul.f32 -1.442695, %v4018_v27 }
 0x227   : > { %3113 = vpow2.f32 %v2592_v59  ;;  %v1465_v44 = vadd.f32 1.0, %v3100_v39  ;;  %v3102_v41 = vpop.eup %3101 }
 0x228   : > { %3115 = vpow2.f32 %v2593_v63  ;;  %v4178_v23 = vpop.eup %3103  ;;  %v1466_v57 = vadd.f32 1.0, %v3102_v41 }
 0x229   : > { %3117 = vrcp.f32 %v1461_v31  ;;  %v3106_v1 = vpop.eup %3105  ;;  %v2597_v31 = vmul.f32 -1.442695, %v3996_v62 }
 0x22a   : > { %3119 = vrcp.f32 %v1462_v14 }
 0x22b   : > { %3121 = vrcp.f32 %v1463_v26 }
 0x22c   : > { %3123 = vrcp.f32 %v1464_v10  ;;  %v2600_v10 = vmul.f32 -1.442695, %v4015_v21 }
 0x22d   : > { %3125 = vrcp.f32 %v1465_v44 }
 0x22e   : > { %v3108_v43 = vpop.eup %3107  ;;  %3127 = vpow2.f32 %v2594_v53 }
 0x22f   : > { %v3110_v59 = vpop.eup %3109  ;;  %3129 = vpow2.f32 %v2595_v50 }
 0x230   : > { %v3112_v63 = vpop.eup %3111  ;;  %3131 = vpow2.f32 %v2596_v28  ;;  %v1467_v26 = vadd.f32 1.0, %v3110_v59  ;;  %v1651_v28 = vmul.f32 %v3106_v1, %v3907_v46  ;;  %v1652_v59 = vmul.f32 %v3108_v43, %v3918_v51 }
 0x231   : > { %v3114_v39 = vpop.eup %3113  ;;  %3133 = vrcp.f32 %v1466_v57  ;;  %v1468_v44 = vadd.f32 1.0, %v3112_v63  ;;  %v4616_v57 = vld [vmem:[#allocation22_spill] sm:$0xff]  ;;  %v4617_v63 = vld [vmem:[#allocation27_spill] sm:$0xff]  ;;  %v2604_v51 = vmul.f32 -1.442695, %v4619_v33 }
 0x232   : > { %v3116_v14 = vpop.eup %3115  ;;  %3135 = vpow2.f32 %v2597_v31  ;;  %v1469_v18 = vadd.f32 1.0, %v3114_v39  ;;  %v2601_v15 = vmul.f32 -1.442695, %v4616_v57 }
 0x233   : > { %v3118_v41 = vpop.eup %3117  ;;  %3137 = vpow2.f32 %v2598_v4  ;;  %v1470_v17 = vadd.f32 1.0, %v3116_v14  ;;  %v2602_v4 = vmul.f32 -1.442695, %v4617_v63 }
 0x234   : > { %v3120_v53 = vpop.eup %3119  ;;  %3139 = vpow2.f32 %v2599_v37  ;;  %v1653_v37 = vmul.f32 %v3118_v41, %v3910_v47 }
 0x235   : > { %v3122_v50 = vpop.eup %3121  ;;  %3141 = vpow2.f32 %v2600_v10  ;;  %v4618_v10 = vld [vmem:[#allocation29_spill] sm:$0xff]  ;;  %v1654_v35 = vmul.f32 %v3120_v53, %v3921_v52 }
 0x236   : > { %v3124_v16 = vpop.eup %3123  ;;  %3143 = vrcp.f32 %v1467_v26  ;;  %v2603_v46 = vmul.f32 -1.442695, %v4618_v10 }
 0x237   : > { %v3126_v31 = vpop.eup %3125  ;;  %3145 = vrcp.f32 %v1468_v44 }
 0x238   : > { %v3128_v14 = vpop.eup %3127  ;;  %3147 = vrcp.f32 %v1469_v18 }
 0x239   : > { %v3130_v34 = vpop.eup %3129  ;;  %3149 = vrcp.f32 %v1470_v17 }
 0x23a   : > { %v3132_v9 = vpop.eup %3131  ;;  %3151 = vpow2.f32 %v2601_v15  ;;  %v1472_v6 = vadd.f32 1.0, %v3130_v34 }
 0x23b   : > { %v3134_v18 = vpop.eup %3133  ;;  %3153 = vpow2.f32 %v2602_v4  ;;  %v1473_v53 = vadd.f32 1.0, %v3132_v9  ;;  %v4620_v4 = vld [vmem:[#allocation30_spill] sm:$0xff]  ;;  %v1657_v9 = vmul.f32 %v3126_v31, %v3937_v3  ;;  %v4621_v3 = vld [vmem:[#allocation35_spill] sm:$0xff] }
 0x23c   : > { %3155 = vpow2.f32 %v2603_v46 }
 0x23d   : > { %3157 = vpow2.f32 %v2604_v51 }
 0x27c   : > { %v1108_v40 = vpop.f32.mrb[32].mxu1 }
 0x27d   : > { %v1715_v42 = vmul.f32 %v1651_v28, %v1108_v40  ;;  %v1110_v39 = vpop.f32.mrb[33].mxu1  ;;  %v2615_v40 = vmul.f32 -1.442695, %v4109_v12  ;;  %v1471_v28 = vadd.f32 1.0, %v3128_v14  ;;  %v1656_v14 = vmul.f32 %v3124_v16, %v3940_v7 }
 0x27e   : > { %v1716_v1 = vmul.f32 %v1652_v59, %v1110_v39  ;;  %v1112_v26 = vpop.f32.mrb[34].mxu1  ;;  %v3136_v39 = vpop.eup %3135 }
 0x27f   : > { %v1717_v43 = vmul.f32 %v1653_v37, %v1112_v26  ;;  %v1114_v44 = vpop.f32.mrb[35].mxu1  ;;  %v3138_v15 = vpop.eup %3137  ;;  %3159 = vpow2.f32 %v2615_v40  ;;  %v1474_v26 = vadd.f32 1.0, %v3136_v39  ;;  %v1658_v40 = vmul.f32 %v3134_v18, %v3943_v8  ;;  %v4622_v8 = vld [vmem:[#allocation37_spill] sm:$0xff] }
 0x280   : > { %v2706_v47 = vpack.c.bf16 %v1716_v1, %v1715_v42  ;;  %v1718_v41 = vmul.f32 %v1654_v35, %v1114_v44  ;;  %v1655_v35 = vmul.f32 %v3122_v50, %v3934_v2  ;;  %v3140_v37 = vpop.eup %3139  ;;  %3161 = vrcp.f32 %v1471_v28 }
 0x281   : > { %v1779_v59 = vpack.c.bf16 %v1717_v43, %v1715_v42  ;;  %v2605_v42 = vmul.f32 -1.442695, %v4620_v4  ;;  %v3142_v46 = vpop.eup %3141  ;;  %3163 = vrcp.f32 %v1472_v6  ;;  %v1475_v2 = vadd.f32 1.0, %v3138_v15 }
 0x282   : > { %1971 = vst [vmem:[%s4197_s14] sm:$0xff] %v2706_v47  ;;  %v1780_v52 = vpack.c.bf16 %v1718_v41, %v1716_v1  ;;  %v2707_v17 = vpack.c.bf16 %v1718_v41, %v1717_v43  ;;  %v3144_v51 = vpop.eup %3143  ;;  %3165 = vrcp.f32 %v1473_v53  ;;  %v1476_v41 = vadd.f32 1.0, %v3140_v37 }
 0x283   : > { %v3146_v47 = vpop.eup %3145  ;;  %v1477_v39 = vadd.f32 1.0, %v3142_v46  ;;  %3167 = vpow2.f32 %v2605_v42  ;;  %v2606_v6 = vmul.f32 -1.442695, %v4621_v3  ;;  %v2607_v18 = vmul.f32 -1.442695, %v4622_v8 }
 0x284   : > { %1972 = vst [vmem:[%s4197_s14 + $0x8] sm:$0xff] %v2707_v17  ;;  %v1118_v34 = vpop.f32.mrb[36].mxu1  ;;  %2170 = vmatprep.mubr.bf16.mxu0 %v1780_v52  ;;  %v3148_v28 = vpop.eup %3147  ;;  %3169 = vrcp.f32 %v1474_v26  ;;  %v1659_v42 = vmul.f32 %v3144_v51, %v3962_v24  ;;  %v4624_v26 = vld [vmem:[#allocation38_spill] sm:$0xff] }
 0x285   : > { %v1719_v44 = vmul.f32 %v1655_v35, %v1118_v34  ;;  %v1120_v1 = vpop.f32.mrb[37].mxu1  ;;  %2171 = vmatmul.mubr.bf16.vlgmr.msra.gmra.mrb[32].mxu0 %v1779_v59  ;;  %v3150_v17 = vpop.eup %3149  ;;  %3171 = vrcp.f32 %v1475_v2  ;;  %v4623_v34 = vld [vmem:[#allocation36_spill] sm:$0xff] }
 0x286   : > { %v1720_v50 = vmul.f32 %v1656_v14, %v1120_v1  ;;  %v1122_v43 = vpop.f32.mrb[38].mxu1  ;;  %v3152_v15 = vpop.eup %3151  ;;  %3173 = vrcp.f32 %v1476_v41  ;;  %v2608_v14 = vmul.f32 -1.442695, %v4623_v34  ;;  %v2609_v1 = vmul.f32 -1.442695, %v4624_v26 }
 0x287   : > { %v1721_v7 = vmul.f32 %v1657_v9, %v1122_v43  ;;  %v1124_v16 = vpop.f32.mrb[39].mxu1  ;;  %v3154_v37 = vpop.eup %3153  ;;  %3175 = vrcp.f32 %v1477_v39  ;;  %v1478_v43 = vadd.f32 1.0, %v3152_v15  ;;  %v1661_v41 = vmul.f32 %v3148_v28, %v3965_v25 }
 0x288   : > { %v2708_v52 = vpack.c.bf16 %v1720_v50, %v1719_v44  ;;  %v1722_v59 = vmul.f32 %v1658_v40, %v1124_v16  ;;  %v3156_v46 = vpop.eup %3155  ;;  %3177 = vpow2.f32 %v2606_v6  ;;  %v1479_v24 = vadd.f32 1.0, %v3154_v37 }
 0x289   : > { %v1781_v31 = vpack.c.bf16 %v1721_v7, %v1719_v44  ;;  %v1660_v44 = vmul.f32 %v3146_v47, %v3968_v29  ;;  %v3158_v2 = vpop.eup %3157  ;;  %3179 = vpow2.f32 %v2607_v18  ;;  %v1662_v39 = vmul.f32 %v3150_v17, %v3971_v30 }
 0x28a   : > { %1973 = vst [vmem:[%s4197_s14 + $0x10] sm:$0xff] %v2708_v52  ;;  %v1782_v53 = vpack.c.bf16 %v1722_v59, %v1720_v50  ;;  %v2709_v35 = vpack.c.bf16 %v1722_v59, %v1721_v7  ;;  %v4215_v7 = vpop.eup %3159  ;;  %v1480_v59 = vadd.f32 1.0, %v3156_v46  ;;  %3181 = vpow2.f32 %v2608_v14 }
 0x28b   : > { %v3162_v52 = vpop.eup %3161  ;;  %v1481_v15 = vadd.f32 1.0, %v3158_v2  ;;  %3183 = vpow2.f32 %v2609_v1  ;;  %v2610_v28 = vmul.f32 -1.442695, %v4099_v32  ;;  %v2611_v30 = vmul.f32 -1.442695, %v4116_v58 }
 0x28c   : > { %1974 = vst [vmem:[%s4197_s14 + $0x18] sm:$0xff] %v2709_v35  ;;  %v1128_v9 = vpop.f32.mrb[40].mxu1  ;;  %2178 = vmatprep.mubr.bf16.mxu0 %v1782_v53  ;;  %v3164_v6 = vpop.eup %3163  ;;  %3185 = vrcp.f32 %v1478_v43  ;;  %v1663_v46 = vmul.f32 %v3162_v52, %v3987_v55 }
 0x28d   : > { %v1723_v50 = vmul.f32 %v1659_v42, %v1128_v9  ;;  %v1130_v40 = vpop.f32.mrb[41].mxu1  ;;  %2179 = vmatmul.mubr.bf16.gmra.mrb[36].mxu0 %v1781_v31  ;;  %v3166_v25 = vpop.eup %3165  ;;  %3187 = vrcp.f32 %v1479_v24  ;;  %v2612_v42 = vmul.f32 -1.442695, %v4102_v48  ;;  %v2613_v9 = vmul.f32 -1.442695, %v4119_v54 }
 0x28e   : > { %v1724_v51 = vmul.f32 %v1660_v44, %v1130_v40  ;;  %v1132_v16 = vpop.f32.mrb[42].mxu1  ;;  %v3168_v35 = vpop.eup %3167  ;;  %3189 = vrcp.f32 %v1480_v59  ;;  %v1664_v2 = vmul.f32 %v3164_v6, %v3993_v60  ;;  %v1665_v24 = vmul.f32 %v3166_v25, %v3990_v56  ;;  %v4625_v6 = vld [vmem:[#allocation45_spill] sm:$0xff] }
 0x28f   : > { %v1725_v29 = vmul.f32 %v1661_v41, %v1132_v16  ;;  %v1134_v47 = vpop.f32.mrb[43].mxu1  ;;  %v3170_v14 = vpop.eup %3169  ;;  %3191 = vrcp.f32 %v1481_v15  ;;  %v2616_v59 = vmul.f32 -1.442695, %v3913_v49  ;;  %v2617_v15 = vmul.f32 -1.442695, %v4625_v6 }
 0x290   : > { %v2710_v31 = vpack.c.bf16 %v1724_v51, %v1723_v50  ;;  %v1726_v53 = vmul.f32 %v1662_v39, %v1134_v47  ;;  %v3172_v1 = vpop.eup %3171  ;;  %3193 = vpow2.f32 %v2610_v28  ;;  %v1666_v39 = vmul.f32 %v3170_v14, %v3996_v62 }
 0x291   : > { %v1783_v18 = vpack.c.bf16 %v1725_v29, %v1723_v50  ;;  %v3174_v43 = vpop.eup %3173  ;;  %v1482_v50 = vadd.f32 1.0, %v3168_v35  ;;  %3195 = vpow2.f32 %v2611_v30  ;;  %v2618_v25 = vmul.f32 -1.442695, %v3928_v61 }
 0x292   : > { %1975 = vst [vmem:[%s4197_s14 + $0x20] sm:$0xff] %v2710_v31  ;;  %v1784_v17 = vpack.c.bf16 %v1726_v53, %v1724_v51  ;;  %v2711_v37 = vpack.c.bf16 %v1726_v53, %v1725_v29  ;;  %v3176_v51 = vpop.eup %3175  ;;  %3197 = vpow2.f32 %v2612_v42  ;;  %v1667_v14 = vmul.f32 %v3172_v1, %v4012_v20 }
 0x293   : > { %v3178_v52 = vpop.eup %3177  ;;  %3199 = vpow2.f32 %v2613_v9 }
 0x294   : > { %1976 = vst [vmem:[%s4197_s14 + $0x28] sm:$0xff] %v2711_v37  ;;  %v1138_v44 = vpop.f32.mrb[44].mxu1  ;;  %2186 = vmatprep.mubr.bf16.mxu0 %v1784_v17  ;;  %v3180_v47 = vpop.eup %3179  ;;  %3201 = vrcp.f32 %v1482_v50 }
 0x295   : > { %v1727_v40 = vmul.f32 %v1663_v46, %v1138_v44  ;;  %v1140_v41 = vpop.f32.mrb[45].mxu1  ;;  %2187 = vmatmul.mubr.bf16.gmra.mrb[40].mxu0 %v1783_v18  ;;  %v3182_v56 = vpop.eup %3181  ;;  %v1483_v18 = vadd.f32 1.0, %v3178_v52  ;;  %3203 = vpow2.f32 %v2616_v59  ;;  %v1484_v37 = vadd.f32 1.0, %v3180_v47 }
 0x296   : > { %v1728_v55 = vmul.f32 %v1664_v2, %v1140_v41  ;;  %v1142_v16 = vpop.f32.mrb[46].mxu1  ;;  %v3184_v62 = vpop.eup %3183  ;;  %3205 = vpow2.f32 %v2617_v15  ;;  %v1485_v46 = vadd.f32 1.0, %v3182_v56  ;;  %v1668_v44 = vmul.f32 %v3174_v43, %v4018_v27 }
 0x297   : > { %v1729_v60 = vmul.f32 %v1665_v24, %v1142_v16  ;;  %v1144_v29 = vpop.f32.mrb[47].mxu1  ;;  %v3186_v17 = vpop.eup %3185  ;;  %3207 = vpow2.f32 %v2618_v25  ;;  %v1486_v50 = vadd.f32 1.0, %v3184_v62  ;;  %v1669_v24 = vmul.f32 %v3176_v51, %v4015_v21 }
 0x298   : > { %v2712_v31 = vpack.c.bf16 %v1728_v55, %v1727_v40  ;;  %v1730_v53 = vmul.f32 %v1666_v39, %v1144_v29  ;;  %v3188_v42 = vpop.eup %3187  ;;  %v1491_v16 = vadd.f32 1.0, %v4178_v23  ;;  %3209 = vrcp.f32 %v1483_v18 }
 0x299   : > { %v1785_v28 = vpack.c.bf16 %v1729_v60, %v1727_v40  ;;  %v3190_v2 = vpop.eup %3189  ;;  %v1670_v39 = vmul.f32 %v3186_v17, %v4616_v57  ;;  %v2619_v59 = vmul.f32 -1.442695, %v3931_v0  ;;  %3211 = vrcp.f32 %v1484_v37 }
 0x29a   : > { %1977 = vst [vmem:[%s4197_s14 + $0x30] sm:$0xff] %v2712_v31  ;;  %v1786_v35 = vpack.c.bf16 %v1730_v53, %v1728_v55  ;;  %v2713_v30 = vpack.c.bf16 %v1730_v53, %v1729_v60  ;;  %v3192_v55 = vpop.eup %3191  ;;  %v2620_v29 = vmul.f32 -1.442695, %v3948_v11  ;;  %3213 = vrcp.f32 %v1485_v46 }
 0x29b   : > { %v3194_v52 = vpop.eup %3193  ;;  %v2621_v23 = vmul.f32 -1.442695, %v3953_v13  ;;  %3215 = vrcp.f32 %v1486_v50  ;;  %v1671_v62 = vmul.f32 %v3188_v42, %v4617_v63  ;;  %v1492_v50 = vadd.f32 1.0, %v4215_v7 }
 0x29c   : > { %1978 = vst [vmem:[%s4197_s14 + $0x38] sm:$0xff] %v2713_v30  ;;  %v1148_v9 = vpop.f32.mrb[48].mxu1  ;;  %2194 = vmatprep.mubr.bf16.mxu0 %v1786_v35  ;;  %v3196_v60 = vpop.eup %3195  ;;  %3217 = vrcp.f32 %v1491_v16  ;;  %v1487_v31 = vadd.f32 1.0, %v3194_v52  ;;  %v1672_v30 = vmul.f32 %v3190_v2, %v4618_v10  ;;  %v2624_v7 = vmul.f32 -1.442695, %v3978_v36 }
 0x29d   : > { %v1731_v40 = vmul.f32 %v1667_v14, %v1148_v9  ;;  %v1150_v41 = vpop.f32.mrb[49].mxu1  ;;  %2195 = vmatmul.mubr.bf16.gmra.mrb[44].mxu0 %v1785_v28  ;;  %v3198_v47 = vpop.eup %3197  ;;  %3219 = vpow2.f32 %v2619_v59  ;;  %v1488_v28 = vadd.f32 1.0, %v3196_v60  ;;  %v1673_v9 = vmul.f32 %v3192_v55, %v4619_v33 }
 0x29e   : > { %v1732_v20 = vmul.f32 %v1668_v44, %v1150_v41  ;;  %v1152_v1 = vpop.f32.mrb[50].mxu1  ;;  %v3200_v57 = vpop.eup %3199  ;;  %3221 = vpow2.f32 %v2620_v29  ;;  %v1489_v18 = vadd.f32 1.0, %v3198_v47  ;;  %v2625_v52 = vmul.f32 -1.442695, %v3981_v38 }
 0x29f   : > { %v1733_v27 = vmul.f32 %v1669_v24, %v1152_v1  ;;  %v1154_v43 = vpop.f32.mrb[51].mxu1  ;;  %v3202_v25 = vpop.eup %3201  ;;  %3223 = vpow2.f32 %v2621_v23  ;;  %v1490_v37 = vadd.f32 1.0, %v3200_v57  ;;  %v2622_v24 = vmul.f32 -1.442695, %v3956_v19 }
 0x2a0   : > { %v2714_v21 = vpack.c.bf16 %v1732_v20, %v1731_v40  ;;  %v1734_v51 = vmul.f32 %v1670_v39, %v1154_v43  ;;  %v3204_v17 = vpop.eup %3203  ;;  %3225 = vrcp.f32 %v1487_v31 }
 0x2a1   : > { %v1787_v15 = vpack.c.bf16 %v1733_v27, %v1731_v40  ;;  %v3206_v44 = vpop.eup %3205  ;;  %v1674_v40 = vmul.f32 %v3202_v25, %v4620_v4  ;;  %3227 = vrcp.f32 %v1488_v28  ;;  %v1493_v60 = vadd.f32 1.0, %v3204_v17 }
 0x2a2   : > { %1979 = vst [vmem:[%s4197_s14 + $0x40] sm:$0xff] %v2714_v21  ;;  %v1788_v53 = vpack.c.bf16 %v1734_v51, %v1732_v20  ;;  %v2715_v56 = vpack.c.bf16 %v1734_v51, %v1733_v27  ;;  %v3208_v41 = vpop.eup %3207  ;;  %v2623_v20 = vmul.f32 -1.442695, %v3959_v22  ;;  %3229 = vrcp.f32 %v1489_v18 }
 0x2a3   : > { %v3210_v16 = vpop.eup %3209  ;;  %3231 = vrcp.f32 %v1490_v37  ;;  %v1494_v51 = vadd.f32 1.0, %v3206_v44  ;;  %v1495_v57 = vadd.f32 1.0, %v3208_v41 }
 0x2a4   : > { %1980 = vst [vmem:[%s4197_s14 + $0x48] sm:$0xff] %v2715_v56  ;;  %v1158_v35 = vpop.f32.mrb[52].mxu1  ;;  %2202 = vmatprep.mubr.bf16.mxu0 %v1788_v53  ;;  %v3212_v1 = vpop.eup %3211  ;;  %3233 = vrcp.f32 %v1492_v50  ;;  %v1675_v29 = vmul.f32 %v3210_v16, %v4621_v3  ;;  %v2626_v3 = vmul.f32 -1.442695, %v3984_v45 }
 0x2a5   : > { %v1735_v14 = vmul.f32 %v1671_v62, %v1158_v35  ;;  %v1160_v46 = vpop.f32.mrb[53].mxu1  ;;  %2203 = vmatmul.mubr.bf16.gmra.mrb[48].mxu0 %v1787_v15  ;;  %v3214_v4 = vpop.eup %3213  ;;  %3235 = vpow2.f32 %v2622_v24  ;;  %v1676_v23 = vmul.f32 %v3212_v1, %v4622_v8  ;;  %v2627_v8 = vmul.f32 -1.442695, %v4003_v5 }
 0x2a6   : > { %v1736_v63 = vmul.f32 %v1672_v30, %v1160_v46  ;;  %v1162_v42 = vpop.f32.mrb[54].mxu1  ;;  %v3216_v43 = vpop.eup %3215  ;;  %3237 = vpow2.f32 %v2623_v20  ;;  %v1677_v56 = vmul.f32 %v3214_v4, %v4623_v34  ;;  %v4627_v20 = vld [vmem:[#allocation21_spill] sm:$0xff] }
 0x2a7   : > { %v1737_v10 = vmul.f32 %v1673_v9, %v1162_v42  ;;  %v1164_v2 = vpop.f32.mrb[55].mxu1  ;;  %v4254_v21 = vpop.eup %3217  ;;  %3239 = vpow2.f32 %v2624_v7  ;;  %v1678_v18 = vmul.f32 %v3216_v43, %v4624_v26  ;;  %v4626_v26 = vld [vmem:[#allocation20_spill] sm:$0xff] }
 0x2a8   : > { %v2716_v33 = vpack.c.bf16 %v1736_v63, %v1735_v14  ;;  %v1738_v55 = vmul.f32 %v1674_v40, %v1164_v2  ;;  %v3220_v15 = vpop.eup %3219  ;;  %3241 = vpow2.f32 %v2625_v52  ;;  %v2628_v42 = vmul.f32 -1.442695, %v4626_v26 }
 0x2a9   : > { %v1789_v39 = vpack.c.bf16 %v1737_v10, %v1735_v14  ;;  %v3222_v25 = vpop.eup %3221  ;;  %3243 = vrcp.f32 %v1493_v60  ;;  %v1496_v14 = vadd.f32 1.0, %v3220_v15 }
 0x2aa   : > { %1981 = vst [vmem:[%s4197_s14 + $0x50] sm:$0xff] %v2716_v33  ;;  %v1790_v59 = vpack.c.bf16 %v1738_v55, %v1736_v63  ;;  %v2717_v27 = vpack.c.bf16 %v1738_v55, %v1737_v10  ;;  %v3224_v35 = vpop.eup %3223  ;;  %3245 = vrcp.f32 %v1494_v51  ;;  %v1497_v44 = vadd.f32 1.0, %v3222_v25 }
 0x2ab   : > { %v3226_v37 = vpop.eup %3225  ;;  %3247 = vrcp.f32 %v1495_v57  ;;  %v1498_v10 = vadd.f32 1.0, %v3224_v35  ;;  %v2629_v33 = vmul.f32 -1.442695, %v4627_v20 }
 0x2ac   : > { %1982 = vst [vmem:[%s4197_s14 + $0x58] sm:$0xff] %v2717_v27  ;;  %v1168_v47 = vpop.f32.mrb[56].mxu1  ;;  %2210 = vmatprep.mubr.bf16.mxu0 %v1790_v59  ;;  %v3228_v9 = vpop.eup %3227  ;;  %3249 = vpow2.f32 %v2626_v3  ;;  %v1679_v2 = vmul.f32 %v3226_v37, %v4099_v32  ;;  %v4629_v32 = vld [vmem:[#allocation24_spill] sm:$0xff]  ;;  %v4631_v37 = vld [vmem:[#allocation19_spill] sm:$0xff] }
 0x2ad   : > { %v1739_v31 = vmul.f32 %v1675_v29, %v1168_v47  ;;  %v1170_v53 = vpop.f32.mrb[57].mxu1  ;;  %2211 = vmatmul.mubr.bf16.gmra.mrb[52].mxu0 %v1789_v39  ;;  %v3230_v63 = vpop.eup %3229  ;;  %3251 = vpow2.f32 %v2627_v8  ;;  %v1680_v1 = vmul.f32 %v3228_v9, %v4116_v58  ;;  %v4628_v39 = vld [vmem:[#allocation23_spill] sm:$0xff]  ;;  %v2631_v60 = vmul.f32 -1.442695, %v4629_v32  ;;  %v4630_v58 = vld [vmem:[#allocation25_spill] sm:$0xff] }
 0x2ae   : > { %v1740_v28 = vmul.f32 %v1676_v23, %v1170_v53  ;;  %v1172_v62 = vpop.f32.mrb[58].mxu1  ;;  %v3232_v24 = vpop.eup %3231  ;;  %3253 = vrcp.f32 %v1496_v14  ;;  %v2630_v4 = vmul.f32 -1.442695, %v4628_v39  ;;  %v1681_v27 = vmul.f32 %v3230_v63, %v4102_v48 }
 0x2af   : > { %v1741_v30 = vmul.f32 %v1677_v56, %v1172_v62  ;;  %v1174_v17 = vpop.f32.mrb[59].mxu1  ;;  %v3234_v16 = vpop.eup %3233  ;;  %3255 = vrcp.f32 %v1497_v44  ;;  %v1682_v47 = vmul.f32 %v3232_v24, %v4119_v54  ;;  %v2632_v15 = vmul.f32 -1.442695, %v4630_v58 }
 0x2b0   : > { %v2718_v46 = vpack.c.bf16 %v1740_v28, %v1739_v31  ;;  %v1742_v34 = vmul.f32 %v1678_v18, %v1174_v17  ;;  %v3236_v7 = vpop.eup %3235  ;;  %3257 = vpow2.f32 %v2628_v42  ;;  %v1683_v14 = vmul.f32 %v4254_v21, %v4631_v37  ;;  %v4633_v42 = vld [vmem:[#allocation31_spill] sm:$0xff] }
 0x2b1   : > { %v1791_v50 = vpack.c.bf16 %v1741_v30, %v1739_v31  ;;  %v3238_v43 = vpop.eup %3237  ;;  %3259 = vrcp.f32 %v1498_v10  ;;  %v1499_v56 = vadd.f32 1.0, %v3236_v7 }
 0x2b2   : > { %1983 = vst [vmem:[%s4197_s14 + $0x60] sm:$0xff] %v2718_v46  ;;  %v1792_v40 = vpack.c.bf16 %v1742_v34, %v1740_v28  ;;  %v2719_v41 = vpack.c.bf16 %v1742_v34, %v1741_v30  ;;  %v3240_v23 = vpop.eup %3239  ;;  %3261 = vpow2.f32 %v2629_v33  ;;  %v1500_v28 = vadd.f32 1.0, %v3238_v43  ;;  %v4632_v34 = vld [vmem:[#allocation26_spill] sm:$0xff] }
 0x2b3   : > { %v3242_v53 = vpop.eup %3241  ;;  %3263 = vpow2.f32 %v2630_v4  ;;  %v1501_v35 = vadd.f32 1.0, %v3240_v23  ;;  %v2633_v9 = vmul.f32 -1.442695, %v4632_v34 }
 0x2b4   : > { %1984 = vst [vmem:[%s4197_s14 + $0x68] sm:$0xff] %v2719_v41  ;;  %v1178_v55 = vpop.f32.mrb[60].mxu1  ;;  %2218 = vmatprep.mubr.bf16.mxu0 %v1792_v40  ;;  %v3244_v3 = vpop.eup %3243  ;;  %3265 = vpow2.f32 %v2631_v60  ;;  %v1502_v17 = vadd.f32 1.0, %v3242_v53  ;;  %v2634_v40 = vmul.f32 -1.442695, %v4633_v42 }
 0x2b5   : > { %v1743_v52 = vmul.f32 %v1679_v2, %v1178_v55  ;;  %v1180_v59 = vpop.f32.mrb[61].mxu1  ;;  %2219 = vmatmul.mubr.bf16.gmra.mrb[56].mxu0 %v1791_v50  ;;  %v3246_v18 = vpop.eup %3245  ;;  %3267 = vpow2.f32 %v2632_v15  ;;  %v1684_v50 = vmul.f32 %v3234_v16, %v4109_v12  ;;  %v1685_v10 = vmul.f32 %v3244_v3, %v3913_v49  ;;  %v4634_v49 = vld [vmem:[#allocation32_spill] sm:$0xff] }
 0x2b6   : > { %v1744_v29 = vmul.f32 %v1680_v1, %v1180_v59  ;;  %v1182_v51 = vpop.f32.mrb[62].mxu1  ;;  %v3248_v30 = vpop.eup %3247  ;;  %3269 = vrcp.f32 %v1499_v56  ;;  %v1686_v55 = vmul.f32 %v3246_v18, %v4625_v6  ;;  %v2635_v60 = vmul.f32 -1.442695, %v4634_v49 }
 0x2b7   : > { %v1745_v57 = vmul.f32 %v1681_v27, %v1182_v51  ;;  %v1184_v31 = vpop.f32.mrb[63].mxu1  ;;  %v3250_v46 = vpop.eup %3249  ;;  %3271 = vrcp.f32 %v1500_v28  ;;  %v1687_v53 = vmul.f32 %v3248_v30, %v3928_v61 }
 0x2b8   : > { %v2720_v25 = vpack.c.bf16 %v1744_v29, %v1743_v52  ;;  %v1746_v48 = vmul.f32 %v1682_v47, %v1184_v31  ;;  %v3252_v63 = vpop.eup %3251  ;;  %3273 = vrcp.f32 %v1501_v35  ;;  %v1503_v7 = vadd.f32 1.0, %v3250_v46  ;;  %v4635_v47 = vld [vmem:[#allocation33_spill] sm:$0xff] }
 0x2b9   : > { %v1793_v62 = vpack.c.bf16 %v1745_v57, %v1743_v52  ;;  %v3254_v2 = vpop.eup %3253  ;;  %3275 = vrcp.f32 %v1502_v17  ;;  %v1504_v52 = vadd.f32 1.0, %v3252_v63  ;;  %v2636_v6 = vmul.f32 -1.442695, %v4635_v47 }
 0x2ba   : > { %1985 = vst [vmem:[%s4197_s14 + $0x70] sm:$0xff] %v2720_v25  ;;  %v1794_v54 = vpack.c.bf16 %v1746_v48, %v1744_v29  ;;  %v2721_v8 = vpack.c.bf16 %v1746_v48, %v1745_v57  ;;  %v3256_v1 = vpop.eup %3255  ;;  %3277 = vpow2.f32 %v2633_v9  ;;  %v4636_v25 = vld [vmem:[#allocation34_spill] sm:$0xff]  ;;  %v1688_v28 = vmul.f32 %v3254_v2, %v3931_v0 }
 0x2bb   : > { %v3258_v4 = vpop.eup %3257  ;;  %3279 = vpow2.f32 %v2634_v40  ;;  %v2637_v48 = vmul.f32 -1.442695, %v4636_v25 }
 0x2bc   : > { %1986 = vst [vmem:[%s4197_s14 + $0x78] sm:$0xff] %v2721_v8  ;;  %v1188_v44 = vpop.f32.mrb[64].mxu1  ;;  %2226 = vmatprep.mubr.bf16.mxu0 %v1794_v54  ;;  %v3260_v43 = vpop.eup %3259  ;;  %3281 = vrcp.f32 %v1503_v7  ;;  %v1505_v31 = vadd.f32 1.0, %v3258_v4  ;;  %v1689_v8 = vmul.f32 %v3256_v1, %v3948_v11  ;;  %v4637_v11 = vld [vmem:[#allocation39_spill] sm:$0xff] }
 0x2bd   : > { %v1747_v41 = vmul.f32 %v1683_v14, %v1188_v44  ;;  %v1190_v24 = vpop.f32.mrb[65].mxu1  ;;  %2227 = vmatmul.mubr.bf16.gmra.mrb[60].mxu0 %v1793_v62  ;;  %v3262_v51 = vpop.eup %3261  ;;  %3283 = vrcp.f32 %v1504_v52  ;;  %v1690_v14 = vmul.f32 %v3260_v43, %v3953_v13  ;;  %v4638_v13 = vld [vmem:[#allocation40_spill] sm:$0xff]  ;;  %v4640_v52 = vld [vmem:[#allocation42_spill] sm:$0xff] }
 0x2be   : > { %v1748_v21 = vmul.f32 %v1684_v50, %v1190_v24  ;;  %v1192_v33 = vpop.f32.mrb[66].mxu1  ;;  %v3264_v57 = vpop.eup %3263  ;;  %v1506_v18 = vadd.f32 1.0, %v3262_v51  ;;  %3285 = vpow2.f32 %v2635_v60 }
 0x2bf   : > { %v1749_v12 = vmul.f32 %v1685_v10, %v1192_v33  ;;  %v1194_v16 = vpop.f32.mrb[67].mxu1  ;;  %v3266_v56 = vpop.eup %3265  ;;  %v1507_v37 = vadd.f32 1.0, %v3264_v57  ;;  %3287 = vpow2.f32 %v2636_v6  ;;  %v2638_v10 = vmul.f32 -1.442695, %v4637_v11 }
 0x2c0   : > { %v2722_v59 = vpack.c.bf16 %v1748_v21, %v1747_v41  ;;  %v1750_v27 = vmul.f32 %v1686_v55, %v1194_v16  ;;  %v3268_v62 = vpop.eup %3267  ;;  %3289 = vrcp.f32 %v1505_v31  ;;  %v1508_v9 = vadd.f32 1.0, %v3266_v56 }
 0x2c1   : > { %v1795_v29 = vpack.c.bf16 %v1749_v12, %v1747_v41  ;;  %v3270_v17 = vpop.eup %3269  ;;  %v1509_v63 = vadd.f32 1.0, %v3268_v62  ;;  %3291 = vpow2.f32 %v2637_v48  ;;  %v2639_v33 = vmul.f32 -1.442695, %v4638_v13  ;;  %v4641_v48 = vld [vmem:[#allocation43_spill] sm:$0xff] }
 0x2c2   : > { %1987 = vst [vmem:[%s4197_s14 + $0x80] sm:$0xff] %v2722_v59  ;;  %v1796_v23 = vpack.c.bf16 %v1750_v27, %v1748_v21  ;;  %v2723_v15 = vpack.c.bf16 %v1750_v27, %v1749_v12  ;;  %v3272_v46 = vpop.eup %3271  ;;  %3293 = vrcp.f32 %v1506_v18  ;;  %v4639_v12 = vld [vmem:[#allocation41_spill] sm:$0xff]  ;;  %v1691_v4 = vmul.f32 %v3270_v17, %v3956_v19  ;;  %v4642_v18 = vld [vmem:[#allocation44_spill] sm:$0xff]  ;;  %v4643_v17 = vld [vmem:[#allocation46_spill] sm:$0xff] }
 0x2c3   : > { %v3274_v50 = vpop.eup %3273  ;;  %3295 = vrcp.f32 %v1507_v37  ;;  %v2640_v16 = vmul.f32 -1.442695, %v4639_v12  ;;  %v2641_v59 = vmul.f32 -1.442695, %v4640_v52  ;;  %v1692_v43 = vmul.f32 %v3272_v46, %v3959_v22 }
 0x2c4   : > { %1988 = vst [vmem:[%s4197_s14 + $0x88] sm:$0xff] %v2723_v15  ;;  %v1198_v3 = vpop.f32.mrb[68].mxu1  ;;  %2234 = vmatprep.mubr.bf16.mxu0 %v1796_v23  ;;  %v3276_v24 = vpop.eup %3275  ;;  %3297 = vrcp.f32 %v1508_v9  ;;  %v1693_v23 = vmul.f32 %v3274_v50, %v3978_v36  ;;  %v2642_v22 = vmul.f32 -1.442695, %v4641_v48  ;;  %v2644_v37 = vmul.f32 -1.442695, %v4643_v17 }
 0x2c5   : > { %v1751_v35 = vmul.f32 %v1687_v53, %v1198_v3  ;;  %v1200_v54 = vpop.f32.mrb[69].mxu1  ;;  %2235 = vmatmul.mubr.bf16.gmra.mrb[64].mxu0 %v1795_v29  ;;  %v3278_v21 = vpop.eup %3277  ;;  %3299 = vrcp.f32 %v1509_v63  ;;  %v1694_v53 = vmul.f32 %v3276_v24, %v3981_v38  ;;  %v4644_v63 = vld [vmem:[#allocation47_spill] sm:$0xff] }
 0x2c6   : > { %v1752_v61 = vmul.f32 %v1688_v28, %v1200_v54  ;;  %v1202_v30 = vpop.f32.mrb[70].mxu1  ;;  %v3280_v7 = vpop.eup %3279  ;;  %v1510_v29 = vadd.f32 1.0, %v3278_v21  ;;  %3301 = vpow2.f32 %v2638_v10 }
 0x2c7   : > { %v1753_v0 = vmul.f32 %v1689_v8, %v1202_v30  ;;  %v1204_v44 = vpop.f32.mrb[71].mxu1  ;;  %v3282_v60 = vpop.eup %3281  ;;  %v1511_v57 = vadd.f32 1.0, %v3280_v7  ;;  %3303 = vpow2.f32 %v2639_v33 }
 0x2c8   : > { %v2724_v40 = vpack.c.bf16 %v1752_v61, %v1751_v35  ;;  %v1754_v41 = vmul.f32 %v1690_v14, %v1204_v44  ;;  %v3284_v15 = vpop.eup %3283  ;;  %3305 = vpow2.f32 %v2640_v16  ;;  %v1695_v44 = vmul.f32 %v3282_v60, %v3984_v45 }
 0x2c9   : > { %v1797_v2 = vpack.c.bf16 %v1753_v0, %v1751_v35  ;;  %v3286_v56 = vpop.eup %3285  ;;  %3307 = vpow2.f32 %v2641_v59  ;;  %v2643_v35 = vmul.f32 -1.442695, %v4642_v18  ;;  %v1696_v24 = vmul.f32 %v3284_v15, %v4003_v5 }
 0x2ca   : > { %1989 = vst [vmem:[%s4197_s14 + $0x90] sm:$0xff] %v2724_v40  ;;  %v1798_v55 = vpack.c.bf16 %v1754_v41, %v1752_v61  ;;  %v2725_v1 = vpack.c.bf16 %v1754_v41, %v1753_v0  ;;  %v3288_v62 = vpop.eup %3287  ;;  %3309 = vrcp.f32 %v1510_v29  ;;  %v1512_v30 = vadd.f32 1.0, %v3286_v56 }
 0x2cb   : > { %v3290_v8 = vpop.eup %3289  ;;  %3311 = vrcp.f32 %v1511_v57  ;;  %v1513_v0 = vadd.f32 1.0, %v3288_v62  ;;  %v2645_v40 = vmul.f32 -1.442695, %v4644_v63 }
 0x2cc   : > { %1990 = vst [vmem:[%s4197_s14 + $0x98] sm:$0xff] %v2725_v1  ;;  %v1208_v27 = vpop.f32.mrb[72].mxu1  ;;  %2242 = vmatprep.mubr.bf16.mxu0 %v1798_v55  ;;  %v3292_v38 = vpop.eup %3291  ;;  %3313 = vpow2.f32 %v2642_v22  ;;  %v1697_v55 = vmul.f32 %v3290_v8, %v4626_v26 }
 0x2cd   : > { %v1755_v51 = vmul.f32 %v1691_v4, %v1208_v27  ;;  %v1210_v6 = vpop.f32.mrb[73].mxu1  ;;  %2243 = vmatmul.mubr.bf16.gmra.mrb[68].mxu0 %v1797_v2  ;;  %v3294_v9 = vpop.eup %3293  ;;  %3315 = vpow2.f32 %v2643_v35  ;;  %v1514_v2 = vadd.f32 1.0, %v3292_v38 }
 0x2ce   : > { %v1756_v19 = vmul.f32 %v1692_v43, %v1210_v6  ;;  %v1212_v31 = vpop.f32.mrb[74].mxu1  ;;  %v3296_v50 = vpop.eup %3295  ;;  %3317 = vpow2.f32 %v2644_v37  ;;  %v1698_v16 = vmul.f32 %v3294_v9, %v4627_v20 }
 0x2cf   : > { %v1757_v3 = vmul.f32 %v1693_v23, %v1212_v31  ;;  %v1214_v28 = vpop.f32.mrb[75].mxu1  ;;  %v3298_v10 = vpop.eup %3297  ;;  %3319 = vrcp.f32 %v1512_v30  ;;  %v1699_v20 = vmul.f32 %v3296_v50, %v4628_v39 }
 0x2d0   : > { %v2726_v54 = vpack.c.bf16 %v1756_v19, %v1755_v51  ;;  %v1758_v36 = vmul.f32 %v1694_v53, %v1214_v28  ;;  %v3300_v1 = vpop.eup %3299  ;;  %3321 = vrcp.f32 %v1513_v0  ;;  %v1700_v22 = vmul.f32 %v3298_v10, %v4629_v32 }
 0x2d1   : > { %v1799_v61 = vpack.c.bf16 %v1757_v3, %v1755_v51  ;;  %v3302_v4 = vpop.eup %3301  ;;  %3323 = vpow2.f32 %v2645_v40 }
 0x2d2   : > { %1991 = vst [vmem:[%s4197_s14 + $0xa0] sm:$0xff] %v2726_v54  ;;  %v1800_v14 = vpack.c.bf16 %v1758_v36, %v1756_v19  ;;  %v2727_v46 = vpack.c.bf16 %v1758_v36, %v1757_v3  ;;  %v3304_v5 = vpop.eup %3303  ;;  %3325 = vrcp.f32 %v1514_v2  ;;  %v1515_v6 = vadd.f32 1.0, %v3302_v4 }
 0x2d3   : > { %v3306_v29 = vpop.eup %3305  ;;  %v1516_v19 = vadd.f32 1.0, %v3304_v5  ;;  %v1701_v54 = vmul.f32 %v3300_v1, %v4630_v58 }
 0x2d4   : > { %1992 = vst [vmem:[%s4197_s14 + $0xa8] sm:$0xff] %v2727_v46  ;;  %v1218_v41 = vpop.f32.mrb[76].mxu1  ;;  %2250 = vmatprep.mubr.bf16.mxu0 %v1800_v14  ;;  %v3308_v26 = vpop.eup %3307  ;;  %v1517_v53 = vadd.f32 1.0, %v3306_v29  ;;  %3327 = vrcp.f32 %v1515_v6 }
 0x2d5   : > { %v1759_v21 = vmul.f32 %v1695_v44, %v1218_v41  ;;  %v1220_v33 = vpop.f32.mrb[77].mxu1  ;;  %2251 = vmatmul.mubr.bf16.gmra.mrb[72].mxu0 %v1799_v61  ;;  %v3310_v57 = vpop.eup %3309  ;;  %v1518_v28 = vadd.f32 1.0, %v3308_v26  ;;  %3329 = vrcp.f32 %v1516_v19 }
 0x2d6   : > { %v1760_v45 = vmul.f32 %v1696_v24, %v1220_v33  ;;  %v1222_v7 = vpop.f32.mrb[78].mxu1  ;;  %v3312_v31 = vpop.eup %3311  ;;  %v1702_v39 = vmul.f32 %v3310_v57, %v4632_v34  ;;  %3331 = vrcp.f32 %v1517_v53 }
 0x2d7   : > { %v1761_v59 = vmul.f32 %v1697_v55, %v1222_v7  ;;  %v1224_v27 = vpop.f32.mrb[79].mxu1  ;;  %v3314_v3 = vpop.eup %3313  ;;  %3333 = vrcp.f32 %v1518_v28  ;;  %v1703_v34 = vmul.f32 %v3312_v31, %v4633_v42 }
 0x2d8   : > { %v2728_v43 = vpack.c.bf16 %v1760_v45, %v1759_v21  ;;  %v1762_v60 = vmul.f32 %v1698_v16, %v1224_v27  ;;  %v3316_v36 = vpop.eup %3315  ;;  %v1519_v44 = vadd.f32 1.0, %v3314_v3 }
 0x2d9   : > { %v1801_v51 = vpack.c.bf16 %v1761_v59, %v1759_v21  ;;  %v3318_v61 = vpop.eup %3317  ;;  %v1520_v24 = vadd.f32 1.0, %v3316_v36 }
 0x2da   : > { %1993 = vst [vmem:[%s4197_s14 + $0xb0] sm:$0xff] %v2728_v43  ;;  %v1802_v23 = vpack.c.bf16 %v1762_v60, %v1760_v45  ;;  %v2729_v15 = vpack.c.bf16 %v1762_v60, %v1761_v59  ;;  %v3320_v14 = vpop.eup %3319  ;;  %v1521_v10 = vadd.f32 1.0, %v3318_v61  ;;  %3335 = vrcp.f32 %v1519_v44 }
 0x2db   : > { %v3322_v9 = vpop.eup %3321  ;;  %v1704_v21 = vmul.f32 %v3320_v14, %v4634_v49  ;;  %3337 = vrcp.f32 %v1520_v24 }
 0x2dc   : > { %1994 = vst [vmem:[%s4197_s14 + $0xb8] sm:$0xff] %v2729_v15  ;;  %v1228_v56 = vpop.f32.mrb[80].mxu1  ;;  %2258 = vmatprep.mubr.bf16.mxu0 %v1802_v23  ;;  %v3324_v58 = vpop.eup %3323  ;;  %v1705_v45 = vmul.f32 %v3322_v9, %v4635_v47  ;;  %3339 = vrcp.f32 %v1521_v10 }
 0x2dd   : > { %v1763_v62 = vmul.f32 %v1699_v20, %v1228_v56  ;;  %v1230_v35 = vpop.f32.mrb[81].mxu1  ;;  %2259 = vmatmul.mubr.bf16.gmra.mrb[76].mxu0 %v1801_v51  ;;  %v3326_v41 = vpop.eup %3325  ;;  %v1522_v33 = vadd.f32 1.0, %v3324_v58 }
 0x2de   : > { %v1764_v8 = vmul.f32 %v1700_v22, %v1230_v35  ;;  %v1232_v37 = vpop.f32.mrb[82].mxu1  ;;  %v1706_v4 = vmul.f32 %v3326_v41, %v4636_v25  ;;  %v3328_v27 = vpop.eup %3327 }
 0x2df   : > { %v1765_v38 = vmul.f32 %v1701_v54, %v1232_v37  ;;  %v1234_v30 = vpop.f32.mrb[83].mxu1  ;;  %v3330_v43 = vpop.eup %3329  ;;  %3341 = vrcp.f32 %v1522_v33  ;;  %v1707_v6 = vmul.f32 %v3328_v27, %v4637_v11 }
 0x2e0   : > { %v2730_v32 = vpack.c.bf16 %v1764_v8, %v1763_v62  ;;  %v1766_v46 = vmul.f32 %v1702_v39, %v1234_v30  ;;  %v3332_v29 = vpop.eup %3331  ;;  %v1708_v23 = vmul.f32 %v3330_v43, %v4638_v13 }
 0x2e1   : > { %v1803_v0 = vpack.c.bf16 %v1765_v38, %v1763_v62  ;;  %v3334_v26 = vpop.eup %3333  ;;  %v1709_v19 = vmul.f32 %v3332_v29, %v4639_v12 }
 0x2e2   : > { %1995 = vst [vmem:[%s4197_s14 + $0xc0] sm:$0xff] %v2730_v32  ;;  %v1804_v50 = vpack.c.bf16 %v1766_v46, %v1764_v8  ;;  %v2731_v40 = vpack.c.bf16 %v1766_v46, %v1765_v38  ;;  %v1710_v53 = vmul.f32 %v3334_v26, %v4640_v52 }
 0x2e4   : > { %1996 = vst [vmem:[%s4197_s14 + $0xc8] sm:$0xff] %v2731_v40  ;;  %v1238_v2 = vpop.f32.mrb[84].mxu1  ;;  %2266 = vmatprep.mubr.bf16.mxu0 %v1804_v50  ;;  %v3336_v3 = vpop.eup %3335 }
 0x2e5   : > { %v1767_v55 = vmul.f32 %v1703_v34, %v1238_v2  ;;  %v1240_v1 = vpop.f32.mrb[85].mxu1  ;;  %2267 = vmatmul.mubr.bf16.gmra.mrb[80].mxu0 %v1803_v0  ;;  %v3338_v62 = vpop.eup %3337  ;;  %v1711_v37 = vmul.f32 %v3336_v3, %v4641_v48 }
 0x2e6   : > { %v1768_v7 = vmul.f32 %v1704_v21, %v1240_v1  ;;  %v1242_v16 = vpop.f32.mrb[86].mxu1  ;;  %v3340_v54 = vpop.eup %3339  ;;  %v1712_v52 = vmul.f32 %v3338_v62, %v4642_v18 }
 0x2e7   : > { %v1769_v42 = vmul.f32 %v1705_v45, %v1242_v16  ;;  %v1244_v59 = vpop.f32.mrb[87].mxu1  ;;  %v1713_v38 = vmul.f32 %v3340_v54, %v4643_v17 }
 0x2e8   : > { %v2732_v5 = vpack.c.bf16 %v1768_v7, %v1767_v55  ;;  %v1770_v49 = vmul.f32 %v1706_v4, %v1244_v59 }
 0x2e9   : > { %v1805_v60 = vpack.c.bf16 %v1769_v42, %v1767_v55  ;;  %v3342_v8 = vpop.eup %3341 }
 0x2ea   : > { %1997 = vst [vmem:[%s4197_s14 + $0xd0] sm:$0xff] %v2732_v5  ;;  %v1806_v47 = vpack.c.bf16 %v1770_v49, %v1768_v7  ;;  %v2733_v51 = vpack.c.bf16 %v1770_v49, %v1769_v42  ;;  %v1714_v32 = vmul.f32 %v3342_v8, %v4644_v63  ;;  %v4341_v63 = vld [vmem:[%s4508_s5] ss:$0 sm:$0xff] }
 0x2ec   : > { %1998 = vst [vmem:[%s4197_s14 + $0xd8] sm:$0xff] %v2733_v51  ;;  %v1248_v25 = vpop.f32.mrb[88].mxu1  ;;  %2274 = vmatprep.mubr.bf16.mxu0 %v1806_v47 }
 0x2ed   : > { %v1771_v15 = vmul.f32 %v1707_v6, %v1248_v25  ;;  %v1250_v57 = vpop.f32.mrb[89].mxu1  ;;  %2275 = vmatmul.mubr.bf16.gmra.mrb[84].mxu0 %v1805_v60 }
 0x2ee   : > { %v1772_v20 = vmul.f32 %v1708_v23, %v1250_v57  ;;  %v1252_v31 = vpop.f32.mrb[90].mxu1 }
 0x2ef   : > { %v1773_v56 = vmul.f32 %v1709_v19, %v1252_v31  ;;  %v1254_v22 = vpop.f32.mrb[91].mxu1 }
 0x2f0   : > { %v2734_v11 = vpack.c.bf16 %v1772_v20, %v1771_v15  ;;  %v1774_v28 = vmul.f32 %v1710_v53, %v1254_v22 }
 0x2f1   : > { %v1807_v35 = vpack.c.bf16 %v1773_v56, %v1771_v15 }
 0x2f2   : > { %1999 = vst [vmem:[%s4197_s14 + $0xe0] sm:$0xff] %v2734_v11  ;;  %v1808_v13 = vpack.c.bf16 %v1774_v28, %v1772_v20  ;;  %v2735_v36 = vpack.c.bf16 %v1774_v28, %v1773_v56 }
 0x2f4   : > { %2000 = vst [vmem:[%s4197_s14 + $0xe8] sm:$0xff] %v2735_v36  ;;  %v1258_v12 = vpop.f32.mrb[92].mxu1  ;;  %2282 = vmatprep.mubr.bf16.mxu0 %v1808_v13 }
 0x2f5   : > { %v1775_v39 = vmul.f32 %v1711_v37, %v1258_v12  ;;  %v1260_v61 = vpop.f32.mrb[93].mxu1  ;;  %2283 = vmatmul.mubr.bf16.gmra.mrb[88].mxu0 %v1807_v35 }
 0x2f6   : > { %v1776_v30 = vmul.f32 %v1712_v52, %v1260_v61  ;;  %v1262_v14 = vpop.f32.mrb[94].mxu1 }
 0x2f7   : > { %v1777_v46 = vmul.f32 %v1713_v38, %v1262_v14  ;;  %v1264_v48 = vpop.f32.mrb[95].mxu1 }
 0x2f8   : > { %v2736_v9 = vpack.c.bf16 %v1776_v30, %v1775_v39  ;;  %v1778_v0 = vmul.f32 %v1714_v32, %v1264_v48 }
 0x2f9   : > { %v1809_v58 = vpack.c.bf16 %v1777_v46, %v1775_v39 }
 0x2fa   : > { %2001 = vst [vmem:[%s4197_s14 + $0xf0] sm:$0xff] %v2736_v9  ;;  %v1810_v18 = vpack.c.bf16 %v1778_v0, %v1776_v30  ;;  %v2737_v44 = vpack.c.bf16 %v1778_v0, %v1777_v46 }
 0x2fc   : > { %2002 = vst [vmem:[%s4197_s14 + $0xf8] sm:$0xff] %v2737_v44  ;;  %2290 = vmatprep.mubr.bf16.mxu0 %v1810_v18 }
 0x2fd   : > { %2291 = vmatmul.mubr.bf16.gmra.mrb[92].mxu0 %v1809_v58 }
 0x358   : > { %v2757_v17 = vpop.f32.mrb[32].mxu0 }
 0x359   : > { %v2758_v50 = vpop.f32.mrb[33].mxu0 }
 0x35a   : > { %v2759_v40 = vadd.f32 %v2758_v50, %v2757_v17  ;;  %v2760_v41 = vpop.f32.mrb[34].mxu0 }
 0x35b   : > { %v2761_v24 = vpop.f32.mrb[35].mxu0 }
 0x35c   : > { %v2173_v34 = vadd.f32 %v2759_v40, %v4341_v63  ;;  %v2762_v10 = vadd.f32 %v2761_v24, %v2760_v41 }
 0x35d   : > { %3470 = shalt.err (!%p3467_p4)
}
 0x35e   : > { %s3471_s14 = scalar_lea.hbm %s4348_s15, 4096  ;;  %s3475_s11 = scalar_lea.hbm %s4509_s6, 8192 }
 0x35f   : > { %p3472_p9 = scmp.ne.s32.totalorder %s4348_s15, %s3471_s14  ;;  %p3476_p8 = scmp.lt.u32.totalorder %s4348_s15, %s4509_s6 }
 0x360   : > { %p3477_p13 = scmp.lt.u32.totalorder %s3475_s11, %s3471_s14  ;;  %p3479_p10 = scmp.lt.u32.totalorder %s3471_s14, %s4348_s15 }
 0x361   : > { %p3473_p0 = pnand %p3472_p9, %p3764_p5 }
 0x362   : > { %p3478_p6 = por %p3477_p13, %p3476_p8 }
 0x363   : > { %p3474_p11 = pneg %p3473_p0 }
 0x364   : > { %p3480_p3 = por %p3479_p10, %p3478_p6 }
 0x366   : > { %p3481_p7 = pnand %p3480_p3, %p3474_p11 }
 0x368   : > { %3484 = shalt.err (!%p3481_p7)
}
 0x369   : > { %s3576_s23 = smov 128   ;;  %s3577_s30 = smov 8   ;;  %v2176_v2 = vadd.f32 %v2762_v10, %v4341_v63  ;;  %v2763_v21 = vpop.f32.mrb[36].mxu0 }
 0x36a   : > { %2899 = dma.vmem_to_hbm [thread:$0]  (%p3764_p5), %s4351_s18, 4096, %s4348_s15, %s2332_s16, %s3576_s23, %s3576_s23, %s3577_s30   ;;  %v2764_v33 = vpop.f32.mrb[37].mxu0 }
 0x36b   : > { %s4383_s9 = scalar_lea.vmem [#allocation11], %s2516_s10  ;;  %v2765_v55 = vadd.f32 %v2764_v33, %v2763_v21  ;;  %v2766_v1 = vpop.f32.mrb[38].mxu0  ;;  %s4453_s16 = scalar_lea.hbm %s4510_s7, %s2739_s22 }
 0x36c   : > { %2299 = vst [vmem:[%s4383_s9] sm:$0xff] %v2173_v34  ;;  %2300 = vst [vmem:[%s4383_s9 + $0x8] sm:$0xff] %v2176_v2  ;;  %v2767_v45 = vpop.f32.mrb[39].mxu0  ;;  %s2367_s10 = sshll.u32 %s4383_s9, 4  ;;  %s2337_s14 = scalar_lea.sflag [#allocation12], %s3812_s21  ;;  %s4455_s10 = int_to_ptr.vmem [resolvable:$true] %s2367_s10 }
 0x36d   : > { %v2181_v7 = vadd.f32 %v2765_v55, %v4341_v63  ;;  %v2768_v16 = vadd.f32 %v2767_v45, %v2766_v1  ;;  %v2769_v42 = vpop.f32.mrb[40].mxu0  ;;  %s3485_s13 = scalar_lea.vmem %s4455_s10, 4096  ;;  %s3578_s29 = smov [#allocation11]  }
 0x36e   : > { %v2770_v59 = vpop.f32.mrb[41].mxu0  ;;  %p3486_p12 = scmp.ne.s32.totalorder %s4455_s10, %s3485_s13  ;;  %s3489_s11 = sshll.u32 %s3578_s29, 4  ;;  %s3490_s11 = int_to_ptr.vmem [resolvable:$false] %s3489_s11 }
 0x36f   : > { %2301 = vst [vmem:[%s4383_s9 + $0x10] sm:$0xff] %v2181_v7  ;;  %v2184_v4 = vadd.f32 %v2768_v16, %v4341_v63  ;;  %v2771_v27 = vadd.f32 %v2770_v59, %v2769_v42  ;;  %v2772_v5 = vpop.f32.mrb[42].mxu0  ;;  %s3491_s28 = scalar_lea.vmem %s3490_s11, 8192  ;;  %p3492_p4 = scmp.lt.s32.totalorder %s4455_s10, %s3490_s11 }
 0x370   : > { %v2773_v49 = vpop.f32.mrb[43].mxu0  ;;  %p3487_p2 = pnand %p3486_p12, %p3764_p5  ;;  %p3493_p9 = scmp.lt.s32.totalorder %s3491_s28, %s3485_s13 }
 0x371   : > { %2302 = vst [vmem:[%s4383_s9 + $0x18] sm:$0xff] %v2184_v4  ;;  %v2189_v43 = vadd.f32 %v2771_v27, %v4341_v63  ;;  %v2774_v60 = vadd.f32 %v2773_v49, %v2772_v5  ;;  %v2775_v47 = vpop.f32.mrb[44].mxu0 }
 0x372   : > { %v2776_v51 = vpop.f32.mrb[45].mxu0  ;;  %p3488_p1 = pneg %p3487_p2  ;;  %p3494_p0 = por %p3493_p9, %p3492_p4 }
 0x373   : > { %2303 = vst [vmem:[%s4383_s9 + $0x20] sm:$0xff] %v2189_v43  ;;  %v2192_v29 = vadd.f32 %v2774_v60, %v4341_v63  ;;  %v2777_v26 = vadd.f32 %v2776_v51, %v2775_v47  ;;  %v2778_v6 = vpop.f32.mrb[46].mxu0 }
 0x374   : > { %v2779_v25 = vpop.f32.mrb[47].mxu0  ;;  %p3495_p11 = pnand %p3494_p0, %p3488_p1 }
 0x375   : > { %2304 = vst [vmem:[%s4383_s9 + $0x28] sm:$0xff] %v2192_v29  ;;  %v2197_v23 = vadd.f32 %v2777_v26, %v4341_v63  ;;  %v2780_v15 = vadd.f32 %v2779_v25, %v2778_v6 }
 0x377   : > { %2305 = vst [vmem:[%s4383_s9 + $0x30] sm:$0xff] %v2197_v23  ;;  %v2200_v57 = vadd.f32 %v2780_v15, %v4341_v63 }
 0x378   : > { %v2781_v19 = vpop.f32.mrb[48].mxu0 }
 0x379   : > { %2306 = vst [vmem:[%s4383_s9 + $0x38] sm:$0xff] %v2200_v57  ;;  %v2782_v20 = vpop.f32.mrb[49].mxu0 }
 0x37a   : > { %v2783_v31 = vadd.f32 %v2782_v20, %v2781_v19  ;;  %v2784_v53 = vpop.f32.mrb[50].mxu0 }
 0x37b   : > { %v2785_v56 = vpop.f32.mrb[51].mxu0 }
 0x37c   : > { %v2205_v22 = vadd.f32 %v2783_v31, %v4341_v63  ;;  %v2786_v3 = vadd.f32 %v2785_v56, %v2784_v53 }
 0x37e   : > { %2307 = vst [vmem:[%s4383_s9 + $0x40] sm:$0xff] %v2205_v22  ;;  %v2208_v11 = vadd.f32 %v2786_v3, %v4341_v63 }
 0x380   : > { %2308 = vst [vmem:[%s4383_s9 + $0x48] sm:$0xff] %v2208_v11  ;;  %v2787_v28 = vpop.f32.mrb[52].mxu0 }
 0x381   : > { %v2788_v62 = vpop.f32.mrb[53].mxu0 }
 0x382   : > { %v2789_v35 = vadd.f32 %v2788_v62, %v2787_v28  ;;  %v2790_v54 = vpop.f32.mrb[54].mxu0 }
 0x383   : > { %v2791_v13 = vpop.f32.mrb[55].mxu0 }
 0x384   : > { %v2213_v36 = vadd.f32 %v2789_v35, %v4341_v63  ;;  %v2792_v8 = vadd.f32 %v2791_v13, %v2790_v54 }
 0x386   : > { %2309 = vst [vmem:[%s4383_s9 + $0x50] sm:$0xff] %v2213_v36  ;;  %v2216_v37 = vadd.f32 %v2792_v8, %v4341_v63 }
 0x388   : > { %2310 = vst [vmem:[%s4383_s9 + $0x58] sm:$0xff] %v2216_v37  ;;  %v2793_v12 = vpop.f32.mrb[56].mxu0 }
 0x389   : > { %v2794_v52 = vpop.f32.mrb[57].mxu0 }
 0x38a   : > { %v2795_v39 = vadd.f32 %v2794_v52, %v2793_v12  ;;  %v2796_v61 = vpop.f32.mrb[58].mxu0 }
 0x38b   : > { %v2797_v38 = vpop.f32.mrb[59].mxu0 }
 0x38c   : > { %v2221_v30 = vadd.f32 %v2795_v39, %v4341_v63  ;;  %v2798_v14 = vadd.f32 %v2797_v38, %v2796_v61 }
 0x38e   : > { %2311 = vst [vmem:[%s4383_s9 + $0x60] sm:$0xff] %v2221_v30  ;;  %v2224_v32 = vadd.f32 %v2798_v14, %v4341_v63 }
 0x390   : > { %2312 = vst [vmem:[%s4383_s9 + $0x68] sm:$0xff] %v2224_v32  ;;  %v2799_v46 = vpop.f32.mrb[60].mxu0 }
 0x391   : > { %v2800_v48 = vpop.f32.mrb[61].mxu0 }
 0x392   : > { %v2801_v9 = vadd.f32 %v2800_v48, %v2799_v46  ;;  %v2802_v0 = vpop.f32.mrb[62].mxu0 }
 0x393   : > { %v2803_v58 = vpop.f32.mrb[63].mxu0 }
 0x394   : > { %v2229_v18 = vadd.f32 %v2801_v9, %v4341_v63  ;;  %v2804_v44 = vadd.f32 %v2803_v58, %v2802_v0 }
 0x396   : > { %2313 = vst [vmem:[%s4383_s9 + $0x70] sm:$0xff] %v2229_v18  ;;  %v2232_v17 = vadd.f32 %v2804_v44, %v4341_v63 }
 0x398   : > { %2314 = vst [vmem:[%s4383_s9 + $0x78] sm:$0xff] %v2232_v17  ;;  %v2805_v50 = vpop.f32.mrb[64].mxu0 }
 0x399   : > { %v2806_v40 = vpop.f32.mrb[65].mxu0 }
 0x39a   : > { %v2807_v41 = vadd.f32 %v2806_v40, %v2805_v50  ;;  %v2808_v24 = vpop.f32.mrb[66].mxu0 }
 0x39b   : > { %v2809_v34 = vpop.f32.mrb[67].mxu0 }
 0x39c   : > { %v2237_v10 = vadd.f32 %v2807_v41, %v4341_v63  ;;  %v2810_v2 = vadd.f32 %v2809_v34, %v2808_v24 }
 0x39e   : > { %2315 = vst [vmem:[%s4383_s9 + $0x80] sm:$0xff] %v2237_v10  ;;  %v2240_v21 = vadd.f32 %v2810_v2, %v4341_v63 }
 0x3a0   : > { %2316 = vst [vmem:[%s4383_s9 + $0x88] sm:$0xff] %v2240_v21  ;;  %v2811_v33 = vpop.f32.mrb[68].mxu0 }
 0x3a1   : > { %v2812_v55 = vpop.f32.mrb[69].mxu0 }
 0x3a2   : > { %v2813_v1 = vadd.f32 %v2812_v55, %v2811_v33  ;;  %v2814_v45 = vpop.f32.mrb[70].mxu0 }
 0x3a3   : > { %v2815_v7 = vpop.f32.mrb[71].mxu0 }
 0x3a4   : > { %v2245_v16 = vadd.f32 %v2813_v1, %v4341_v63  ;;  %v2816_v4 = vadd.f32 %v2815_v7, %v2814_v45 }
 0x3a6   : > { %2317 = vst [vmem:[%s4383_s9 + $0x90] sm:$0xff] %v2245_v16  ;;  %v2248_v42 = vadd.f32 %v2816_v4, %v4341_v63 }
 0x3a8   : > { %2318 = vst [vmem:[%s4383_s9 + $0x98] sm:$0xff] %v2248_v42  ;;  %v2817_v59 = vpop.f32.mrb[72].mxu0 }
 0x3a9   : > { %v2818_v27 = vpop.f32.mrb[73].mxu0 }
 0x3aa   : > { %v2819_v5 = vadd.f32 %v2818_v27, %v2817_v59  ;;  %v2820_v49 = vpop.f32.mrb[74].mxu0 }
 0x3ab   : > { %v2821_v43 = vpop.f32.mrb[75].mxu0 }
 0x3ac   : > { %v2253_v60 = vadd.f32 %v2819_v5, %v4341_v63  ;;  %v2822_v29 = vadd.f32 %v2821_v43, %v2820_v49 }
 0x3ae   : > { %2319 = vst [vmem:[%s4383_s9 + $0xa0] sm:$0xff] %v2253_v60  ;;  %v2256_v47 = vadd.f32 %v2822_v29, %v4341_v63 }
 0x3b0   : > { %2320 = vst [vmem:[%s4383_s9 + $0xa8] sm:$0xff] %v2256_v47  ;;  %v2823_v51 = vpop.f32.mrb[76].mxu0 }
 0x3b1   : > { %v2824_v26 = vpop.f32.mrb[77].mxu0 }
 0x3b2   : > { %v2825_v6 = vadd.f32 %v2824_v26, %v2823_v51  ;;  %v2826_v25 = vpop.f32.mrb[78].mxu0 }
 0x3b3   : > { %v2827_v23 = vpop.f32.mrb[79].mxu0 }
 0x3b4   : > { %v2261_v15 = vadd.f32 %v2825_v6, %v4341_v63  ;;  %v2828_v57 = vadd.f32 %v2827_v23, %v2826_v25 }
 0x3b6   : > { %2321 = vst [vmem:[%s4383_s9 + $0xb0] sm:$0xff] %v2261_v15  ;;  %v2264_v19 = vadd.f32 %v2828_v57, %v4341_v63 }
 0x3b8   : > { %2322 = vst [vmem:[%s4383_s9 + $0xb8] sm:$0xff] %v2264_v19  ;;  %v2829_v20 = vpop.f32.mrb[80].mxu0 }
 0x3b9   : > { %v2830_v31 = vpop.f32.mrb[81].mxu0 }
 0x3ba   : > { %v2831_v53 = vadd.f32 %v2830_v31, %v2829_v20  ;;  %v2832_v56 = vpop.f32.mrb[82].mxu0 }
 0x3bb   : > { %v2833_v22 = vpop.f32.mrb[83].mxu0 }
 0x3bc   : > { %v2269_v3 = vadd.f32 %v2831_v53, %v4341_v63  ;;  %v2834_v11 = vadd.f32 %v2833_v22, %v2832_v56 }
 0x3be   : > { %2323 = vst [vmem:[%s4383_s9 + $0xc0] sm:$0xff] %v2269_v3  ;;  %v2272_v28 = vadd.f32 %v2834_v11, %v4341_v63 }
 0x3c0   : > { %2324 = vst [vmem:[%s4383_s9 + $0xc8] sm:$0xff] %v2272_v28  ;;  %v2835_v62 = vpop.f32.mrb[84].mxu0 }
 0x3c1   : > { %v2836_v35 = vpop.f32.mrb[85].mxu0 }
 0x3c2   : > { %v2837_v54 = vadd.f32 %v2836_v35, %v2835_v62  ;;  %v2838_v13 = vpop.f32.mrb[86].mxu0 }
 0x3c3   : > { %v2839_v36 = vpop.f32.mrb[87].mxu0 }
 0x3c4   : > { %v2277_v8 = vadd.f32 %v2837_v54, %v4341_v63  ;;  %v2840_v37 = vadd.f32 %v2839_v36, %v2838_v13 }
 0x3c6   : > { %2325 = vst [vmem:[%s4383_s9 + $0xd0] sm:$0xff] %v2277_v8  ;;  %v2280_v12 = vadd.f32 %v2840_v37, %v4341_v63 }
 0x3c8   : > { %2326 = vst [vmem:[%s4383_s9 + $0xd8] sm:$0xff] %v2280_v12  ;;  %v2841_v52 = vpop.f32.mrb[88].mxu0 }
 0x3c9   : > { %v2842_v39 = vpop.f32.mrb[89].mxu0 }
 0x3ca   : > { %v2843_v61 = vadd.f32 %v2842_v39, %v2841_v52  ;;  %v2844_v38 = vpop.f32.mrb[90].mxu0 }
 0x3cb   : > { %v2845_v30 = vpop.f32.mrb[91].mxu0 }
 0x3cc   : > { %v2285_v14 = vadd.f32 %v2843_v61, %v4341_v63  ;;  %v2846_v32 = vadd.f32 %v2845_v30, %v2844_v38 }
 0x3ce   : > { %2327 = vst [vmem:[%s4383_s9 + $0xe0] sm:$0xff] %v2285_v14  ;;  %v2288_v46 = vadd.f32 %v2846_v32, %v4341_v63 }
 0x3d0   : > { %2328 = vst [vmem:[%s4383_s9 + $0xe8] sm:$0xff] %v2288_v46  ;;  %v2847_v48 = vpop.f32.mrb[92].mxu0 }
 0x3d1   : > { %v2848_v9 = vpop.f32.mrb[93].mxu0 }
 0x3d2   : > { %v2849_v0 = vadd.f32 %v2848_v9, %v2847_v48  ;;  %v2850_v58 = vpop.f32.mrb[94].mxu0 }
 0x3d3   : > { %v2851_v18 = vpop.f32.mrb[95].mxu0 }
 0x3d4   : > { %v2293_v44 = vadd.f32 %v2849_v0, %v4341_v63  ;;  %v2852_v17 = vadd.f32 %v2851_v18, %v2850_v58 }
 0x3d6   : > { %2329 = vst [vmem:[%s4383_s9 + $0xf0] sm:$0xff] %v2293_v44  ;;  %v2296_v50 = vadd.f32 %v2852_v17, %v4341_v63 }
 0x3d8   : > { %2330 = vst [vmem:[%s4383_s9 + $0xf8] sm:$0xff] %v2296_v50 }
 0x3d9   : > { %3498 = shalt.err (!%p3495_p11)
}
 0x3da   : > { %s3499_s22 = scalar_lea.hbm %s4453_s16, 4096  ;;  %s3503_s9 = scalar_lea.hbm %s4510_s7, 8192 }
 0x3db   : > { %p3500_p8 = scmp.ne.s32.totalorder %s4453_s16, %s3499_s22  ;;  %p3504_p10 = scmp.lt.u32.totalorder %s4453_s16, %s4510_s7 }
 0x3dc   : > { %p3505_p3 = scmp.lt.u32.totalorder %s3503_s9, %s3499_s22  ;;  %p3507_p12 = scmp.lt.u32.totalorder %s3499_s22, %s4453_s16 }
 0x3dd   : > { %p3501_p13 = pnand %p3500_p8, %p3764_p5 }
 0x3de   : > { %p3506_p7 = por %p3505_p3, %p3504_p10 }
 0x3df   : > { %p3502_p6 = pneg %p3501_p13 }
 0x3e0   : > { %p3508_p2 = por %p3507_p12, %p3506_p7 }
 0x3e2   : > { %p3509_p1 = pnand %p3508_p2, %p3502_p6 }
 0x3e4   : > { %3512 = shalt.err (!%p3509_p1)
}
 0x3e5   : > { %2900 = dma.vmem_to_hbm [thread:$0]  (%p3764_p5), %s4455_s10, 4096, %s4453_s16, %s2337_s14, %s3576_s23, %s3576_s23, %s3577_s30  }
 0x3e6 PF: > { %s4645_s13 = sld [smem:[#allocation18_spill]]  ;;  %s2382_s29 = sand.u32 1, %s3551_s24  }
 0x3e7   : > { %p4647_p9 = scmp.ge.s32.totalorder %s3563_s27, 2  ;;  %s2383_s11 = scalar_lea.sflag [#allocation4], %s2382_s29 }
 0x3ec   : > { %p4646_p4 = scmp.ne.s32.totalorder %s4645_s13, 0 }
 0x3ee   : > { %p2918_p0 = pnand %p4647_p9, %p4646_p4 }
 0x3f0   : > { %3542 = dma.done.wait (!%p2918_p0), %s2383_s11, 4096  }
 0x3f1   : > { %3544 = vsyncadd (!%p2918_p0), %s2383_s11, 4294963200  ;;  %s2392_s20 = scalar_lea.sflag [#allocation12], %s2382_s29 }
 0x3f2   : > { %3546 = dma.done.wait (!%p2918_p0), %s2392_s20, 4096  }
 0x3f3   : > { %3548 = vsyncadd (!%p2918_p0), %s2392_s20, 4294963200  ;;  %p26_p5 = scmp.ge.s32.totalorder %s3750_s8, 4   ;;  %s4648_s24 = smov %s3555_s25 }
 0x3f4   : > { %s4649_s25 = smov %s3559_s26  ;;  %s4650_s26 = smov %s3760_s19 }
 0x3f5   : > { %s4651_s27 = smov %s3750_s8  ;;  %28 = sbr.rel (!%p26_p5) target bundleno = 9 (0x9), region = 118 }
 0x3fc   :  { %2397 = vsyncpa [#allocation3], 1 }
 0x3fd   :  { %2399 = vsyncpa [#allocation3 + $0x1], 1 }
 0x3fe   :  { %2400 = vsyncpa [#allocation6], 1 }
 0x3ff   :  { %2401 = vsyncpa [#allocation9], 1 }
 0x400   :  { %2402 = vsyncpa [#allocation4], 1 }
 0x401   :  { %2404 = vsyncpa [#allocation4 + $0x1], 1 }
 0x402   :  { %2405 = vsyncpa [#allocation12], 1 }
 0x403   :  { %2407 = vsyncpa [#allocation12 + $0x1], 1 }

</bundles_post_ra>
